<compile_context>
chip_gen: v5e
topology: v5e:2x2
jax: 0.10.0
libtpu: 0.0.40
codegen_flags: <defaults>
</compile_context>

<pallas_src>
import jax
import jax.numpy as jnp
from jax import lax
from jax.experimental import pallas as pl
from jax.experimental.pallas import tpu as pltpu

LANE = 128          # lane-dense output / hidden width
K1_PAD = 128        # conv1 contraction: 5*5*3 = 75  -> 128
K2_PAD = 256        # conv2 contraction: 5*5*6 = 150 -> 256
KD_PAD = 512        # dense1 contraction: 16*5*5 = 400 -> 512
TILE_M = 256        # row tile for the pipelined M grid


def _round_up(x, m):
    return (x + m - 1) // m * m


# ----------------------------- Pallas kernels ------------------------------ #

def _conv_relu_pool_kernel(p_ref, w_ref, b_ref, o_ref):
    """Fused conv (as matmul over im2col rows) + bias + ReLU + 2x2 maxpool.

    p_ref : (4, tile_m, K_pad)  -- the 4 pooling candidates of each pooled pixel
    w_ref : (K_pad, 128)        -- zero-padded flat conv weight
    b_ref : (1, 128)            -- zero-padded bias
    o_ref : (tile_m, 128)       -- pooled activations, channels on lanes
    """
    w = w_ref[...]
    m = jnp.dot(p_ref[0], w, preferred_element_type=jnp.float32)
    for g in range(1, 4):
        m = jnp.maximum(m, jnp.dot(p_ref[g], w, preferred_element_type=jnp.float32))
    # bias is identical across pooling candidates, ReLU is monotone:
    # relu(max_g(conv_g) + b) == maxpool(relu(conv + b))
    o_ref[...] = jnp.maximum(m + b_ref[...], 0.0).astype(o_ref.dtype)


def _mlp_head_kernel(x_ref, w1_ref, b1_ref, w2_ref, b2_ref, w3_ref, b3_ref, o_ref):
    """dense1+ReLU -> dense2+ReLU -> dense3, all weights VMEM-resident."""
    h = jnp.dot(x_ref[...], w1_ref[...], preferred_element_type=jnp.float32) + b1_ref[...]
    h = jnp.maximum(h, 0.0)
    h = jnp.dot(h, w2_ref[...], preferred_element_type=jnp.float32) + b2_ref[...]
    h = jnp.maximum(h, 0.0)
    y = jnp.dot(h, w3_ref[...], preferred_element_type=jnp.float32) + b3_ref[...]
    o_ref[...] = y.astype(o_ref.dtype)


# ------------------------------ Pallas wrappers ----------------------------- #

def conv_relu_pool(patches, w, b):
    """patches: (4, M, K_pad) grouped by pooling candidate. Returns (M, 128)."""
    G, M, Kp = patches.shape
    assert G == 4 and w.shape == (Kp, LANE) and b.shape == (1, LANE)
    tile_m = min(TILE_M, _round_up(M, 8))
    M_pad = _round_up(M, tile_m)
    if M_pad != M:
        patches = jnp.pad(patches, ((0, 0), (0, M_pad - M), (0, 0)))
    out = pl.pallas_call(
        _conv_relu_pool_kernel,
        out_shape=jax.ShapeDtypeStruct((M_pad, LANE), jnp.float32),
        grid=(M_pad // tile_m,),
        in_specs=[
            pl.BlockSpec((4, tile_m, Kp), lambda i: (0, i, 0)),
            pl.BlockSpec((Kp, LANE), lambda i: (0, 0)),
            pl.BlockSpec((1, LANE), lambda i: (0, 0)),
        ],
        out_specs=pl.BlockSpec((tile_m, LANE), lambda i: (i, 0)),
        compiler_params=pltpu.CompilerParams(dimension_semantics=("parallel",)),
    )(patches, w, b)
    return out[:M]


def mlp_head(x, params):
    """x: (N, KD_PAD). Returns (N, 128); real logits are columns 0:10."""
    M, Kp = x.shape
    assert Kp == KD_PAD
    tile_m = min(TILE_M, _round_up(M, 8))
    M_pad = _round_up(M, tile_m)
    if M_pad != M:
        x = jnp.pad(x, ((0, M_pad - M), (0, 0)))
    out = pl.pallas_call(
        _mlp_head_kernel,
        out_shape=jax.ShapeDtypeStruct((M_pad, LANE), jnp.float32),
        grid=(M_pad // tile_m,),
        in_specs=[
            pl.BlockSpec((tile_m, KD_PAD), lambda i: (i, 0)),
            pl.BlockSpec((KD_PAD, LANE), lambda i: (0, 0)),
            pl.BlockSpec((1, LANE), lambda i: (0, 0)),
            pl.BlockSpec((LANE, LANE), lambda i: (0, 0)),
            pl.BlockSpec((1, LANE), lambda i: (0, 0)),
            pl.BlockSpec((LANE, LANE), lambda i: (0, 0)),
            pl.BlockSpec((1, LANE), lambda i: (0, 0)),
        ],
        out_specs=pl.BlockSpec((tile_m, LANE), lambda i: (i, 0)),
        compiler_params=pltpu.CompilerParams(dimension_semantics=("parallel",)),
    )(x, params["wd1"], params["bd1"], params["wd2"], params["bd2"],
      params["wd3"], params["bd3"])
    return out[:M]


# ------------------------------- JAX glue ----------------------------------- #

def _im2col_pool_groups(x_nhwc, K):
    """KxK valid-conv patches, grouped by 2x2/stride-2 pooling candidate.

    Returns (4, N*PH*PW, K*K*C) with feature order (kh, kw, c); group index
    g = dh*2 + dw corresponds to output pixel (2*ph + dh, 2*pw + dw).
    """
    N, H, W, C = x_nhwc.shape
    OH, OW = H - K + 1, W - K + 1
    PH, PW = OH // 2, OW // 2
    cols = [x_nhwc[:, kh:kh + OH, kw:kw + OW, :] for kh in range(K) for kw in range(K)]
    p = jnp.concatenate(cols, axis=-1)                       # (N, OH, OW, K*K*C)
    p = p[:, :2 * PH, :2 * PW, :]                            # floor-pool edge (no-op here)
    p = p.reshape(N, PH, 2, PW, 2, K * K * C)
    p = p.transpose(2, 4, 0, 1, 3, 5).reshape(4, N * PH * PW, K * K * C)
    return p, (N, PH, PW)


def convnet_forward(params, x_nchw):
    # One cheap layout change of the raw input; everything after stays NHWC /
    # channels-on-lanes. All other permutations were baked into the weights.
    x = x_nchw.transpose(0, 2, 3, 1)                                  # (N,32,32,3)

    # stage 1: conv1 + ReLU + pool1 (single fused kernel)
    p1, (N, PH1, PW1) = _im2col_pool_groups(x, K=5)                   # (4, N*196, 75)
    p1 = jnp.pad(p1, ((0, 0), (0, 0), (0, K1_PAD - p1.shape[-1])))
    h1 = conv_relu_pool(p1, params["w1"], params["b1"])               # (N*196, 128)
    h1 = h1[:, :6].reshape(N, PH1, PW1, 6)                            # (N,14,14,6)

    # stage 2: conv2 + ReLU + pool2 (single fused kernel)
    p2, (_, PH2, PW2) = _im2col_pool_groups(h1, K=5)                  # (4, N*25, 150)
    p2 = jnp.pad(p2, ((0, 0), (0, 0), (0, K2_PAD - p2.shape[-1])))
    h2 = conv_relu_pool(p2, params["w2"], params["b2"])               # (N*25, 128)

    # flatten in NHWC order (ph, pw, c); dense1 weight rows were permuted at
    # init to match, so this is equivalent to torch's x.view(-1, 16*5*5).
    flat = h2[:, :16].reshape(N, PH2 * PW2 * 16)                      # (N,400)
    flat = jnp.pad(flat, ((0, 0), (0, KD_PAD - flat.shape[-1])))      # (N,512)

    out = mlp_head(flat, params)                                      # (N,128)
    return out[:, :10]


# ------------------------------- parameters --------------------------------- #

def init_params(key):
    """Deterministic synthetic parameters, PyTorch-style uniform(-1/sqrt(fan_in)),
    stored pre-permuted and zero-padded to the lane-dense kernel layouts.

    Mapping from torch layouts (for reference):
      w1  <- conv1.weight (6,3,5,5).transpose(2,3,1,0).reshape(75,6)      rows: (kh,kw,cin)
      w2  <- conv2.weight (16,6,5,5).transpose(2,3,1,0).reshape(150,16)   rows: (kh,kw,cin)
      wd1 <- dense1.weight.T with its 400 input rows permuted from (c,ph,pw)
             to NHWC-flatten order (ph,pw,c)
      wd2/wd3 <- dense{2,3}.weight.T
    Zero-padded weight rows make the padded activation columns contribute 0.
    """
    ks = jax.random.split(key, 10)

    def unif(k, shape, fan_in):
        bound = 1.0 / jnp.sqrt(jnp.array(fan_in, jnp.float32))
        return jax.random.uniform(k, shape, jnp.float32, -bound, bound)

    def pad_w(a, rows, cols):
        return jnp.pad(a, ((0, rows - a.shape[0]), (0, cols - a.shape[1])))

    def pad_b(a, cols=LANE):
        return jnp.pad(a, (0, cols - a.shape[0])).reshape(1, cols)

    w1 = unif(ks[0], (75, 6), 75)
    b1 = unif(ks[1], (6,), 75)
    w2 = unif(ks[2], (150, 16), 150)
    b2 = unif(ks[3], (16,), 150)
    wd1 = unif(ks[4], (400, 120), 400)
    bd1 = unif(ks[5], (120,), 400)
    wd2 = unif(ks[6], (120, 84), 120)
    bd2 = unif(ks[7], (84,), 120)
    wd3 = unif(ks[8], (84, 10), 84)
    bd3 = unif(ks[9], (10,), 84)

    return {
        "w1": pad_w(w1, K1_PAD, LANE), "b1": pad_b(b1),
        "w2": pad_w(w2, K2_PAD, LANE), "b2": pad_b(b2),
        "wd1": pad_w(wd1, KD_PAD, LANE), "bd1": pad_b(bd1),
        "wd2": pad_w(wd2, LANE, LANE), "bd2": pad_b(bd2),
        "wd3": pad_w(wd3, LANE, LANE), "bd3": pad_b(bd3),
    }


# ------------------------------ XLA reference -------------------------------- #

def _ref_forward(params, x_nchw):
    """Pure-XLA reference with the same (unpadded) weights, for validation."""
    x = x_nchw.transpose(0, 2, 3, 1)
    w1 = params["w1"][:75, :6].reshape(5, 5, 3, 6)        # HWIO
    w2 = params["w2"][:150, :16].reshape(5, 5, 6, 16)

    def conv(v, w):
        return lax.conv_general_dilated(
            v, w, (1, 1), "VALID",
            dimension_numbers=("NHWC", "HWIO", "NHWC"),
            precision=lax.Precision.HIGHEST)

    def pool(v):
        return lax.reduce_window(v, -jnp.inf, lax.max,
                                 (1, 2, 2, 1), (1, 2, 2, 1), "VALID")

    h = pool(jax.nn.relu(conv(x, w1) + params["b1"][0, :6]))
    h = pool(jax.nn.relu(conv(h, w2) + params["b2"][0, :16]))
    flat = h.reshape(h.shape[0], -1)                       # NHWC flatten (ph,pw,c)
    h = jax.nn.relu(flat @ params["wd1"][:400, :120] + params["bd1"][0, :120])
    h = jax.nn.relu(h @ params["wd2"][:120, :84] + params["bd2"][0, :84])
    return h @ params["wd3"][:84, :10] + params["bd3"][0, :10]


# ---------------------------------- main ------------------------------------ #

if __name__ == "__main__":
    key = jax.random.PRNGKey(0)
    k_params, k_x = jax.random.split(key)

    params = init_params(k_params)
    # Input consistent with the module: NCHW, 3 channels, 32x32 (=> 16*5*5 flatten).
    x = jax.random.normal(k_x, (2, 3, 32, 32), dtype=jnp.float32)

    out = jax.jit(convnet_forward)(params, x)
    out = jax.block_until_ready(out)
    assert out.shape == (2, 10) and out.dtype == jnp.float32

    ref = jax.block_until_ready(jax.jit(_ref_forward)(params, x))
    err = float(jnp.max(jnp.abs(out - ref)))
    assert err < 5e-2, f"mismatch vs XLA reference: max abs err {err}"

    print("KERNEL_OK")
</pallas_src>

<mosaic_0001>
module attributes {stable_mosaic.version = 11 : i64} {
  func.func @_conv_relu_pool_kernel(%arg0: i32, %arg1: memref<4x256x128xf32, #tpu.memory_space<vmem>>, %arg2: memref<128x128xf32, #tpu.memory_space<vmem>>, %arg3: memref<1x128xf32, #tpu.memory_space<vmem>>, %arg4: memref<256x128xf32, #tpu.memory_space<vmem>>) attributes {dimension_semantics = [#tpu.dimension_semantics<parallel>], iteration_bounds = array<i64: 2>, scalar_prefetch = 0 : i64, scratch_operands = 0 : i64, tpu.core_type = #tpu.core_type<tc>, window_params = [{transform_indices = @transform_0, window_bounds = array<i64: 4, 256, 128>}, {pipeline_mode = #tpu.pipeline_mode<synchronous>, transform_indices = @transform_1, window_bounds = array<i64: 128, 128>}, {pipeline_mode = #tpu.pipeline_mode<synchronous>, transform_indices = @transform_2, window_bounds = array<i64: 1, 128>}, {transform_indices = @transform_3, window_bounds = array<i64: 256, 128>}]} {
    %c0 = arith.constant 0 : index
    %c0_0 = arith.constant 0 : index
    %0 = vector.load %arg2[%c0, %c0_0] : memref<128x128xf32, #tpu.memory_space<vmem>>, vector<128x128xf32>
    %c0_1 = arith.constant 0 : index
    %c0_2 = arith.constant 0 : index
    %c0_3 = arith.constant 0 : index
    %1 = vector.load %arg1[%c0_1, %c0_2, %c0_3] : memref<4x256x128xf32, #tpu.memory_space<vmem>>, vector<1x256x128xf32>
    %2 = vector.shape_cast %1 : vector<1x256x128xf32> to vector<256x128xf32>
    %cst = arith.constant dense<0.000000e+00> : vector<256x128xf32>
    %3 = tpu.matmul %2, %0, %cst {dimension_numbers = #tpu.dot_dimension_numbers<[1], [0], [0], [1], [0, 0, 1, 1], [], []>} : vector<256x128xf32>, vector<128x128xf32>, vector<256x128xf32> -> vector<256x128xf32>
    %c1 = arith.constant 1 : index
    %c0_4 = arith.constant 0 : index
    %c0_5 = arith.constant 0 : index
    %4 = vector.load %arg1[%c1, %c0_4, %c0_5] : memref<4x256x128xf32, #tpu.memory_space<vmem>>, vector<1x256x128xf32>
    %5 = vector.shape_cast %4 : vector<1x256x128xf32> to vector<256x128xf32>
    %cst_6 = arith.constant dense<0.000000e+00> : vector<256x128xf32>
    %6 = tpu.matmul %5, %0, %cst_6 {dimension_numbers = #tpu.dot_dimension_numbers<[1], [0], [0], [1], [0, 0, 1, 1], [], []>} : vector<256x128xf32>, vector<128x128xf32>, vector<256x128xf32> -> vector<256x128xf32>
    %7 = arith.maximumf %3, %6 : vector<256x128xf32>
    %c2 = arith.constant 2 : index
    %c0_7 = arith.constant 0 : index
    %c0_8 = arith.constant 0 : index
    %8 = vector.load %arg1[%c2, %c0_7, %c0_8] : memref<4x256x128xf32, #tpu.memory_space<vmem>>, vector<1x256x128xf32>
    %9 = vector.shape_cast %8 : vector<1x256x128xf32> to vector<256x128xf32>
    %cst_9 = arith.constant dense<0.000000e+00> : vector<256x128xf32>
    %10 = tpu.matmul %9, %0, %cst_9 {dimension_numbers = #tpu.dot_dimension_numbers<[1], [0], [0], [1], [0, 0, 1, 1], [], []>} : vector<256x128xf32>, vector<128x128xf32>, vector<256x128xf32> -> vector<256x128xf32>
    %11 = arith.maximumf %7, %10 : vector<256x128xf32>
    %c3 = arith.constant 3 : index
    %c0_10 = arith.constant 0 : index
    %c0_11 = arith.constant 0 : index
    %12 = vector.load %arg1[%c3, %c0_10, %c0_11] : memref<4x256x128xf32, #tpu.memory_space<vmem>>, vector<1x256x128xf32>
    %13 = vector.shape_cast %12 : vector<1x256x128xf32> to vector<256x128xf32>
    %cst_12 = arith.constant dense<0.000000e+00> : vector<256x128xf32>
    %14 = tpu.matmul %13, %0, %cst_12 {dimension_numbers = #tpu.dot_dimension_numbers<[1], [0], [0], [1], [0, 0, 1, 1], [], []>} : vector<256x128xf32>, vector<128x128xf32>, vector<256x128xf32> -> vector<256x128xf32>
    %15 = arith.maximumf %11, %14 : vector<256x128xf32>
    %c0_13 = arith.constant 0 : index
    %c0_14 = arith.constant 0 : index
    %16 = vector.load %arg3[%c0_13, %c0_14] : memref<1x128xf32, #tpu.memory_space<vmem>>, vector<1x128xf32>
    %17 = vector.broadcast %16 : vector<1x128xf32> to vector<256x128xf32>
    %18 = arith.addf %15, %17 : vector<256x128xf32>
    %cst_15 = arith.constant 0.000000e+00 : f32
    %19 = vector.broadcast %cst_15 : f32 to vector<256x128xf32>
    %20 = arith.maximumf %18, %19 : vector<256x128xf32>
    %c0_16 = arith.constant 0 : index
    %c0_17 = arith.constant 0 : index
    %21 = vector.load %arg4[%c0_16, %c0_17] : memref<256x128xf32, #tpu.memory_space<vmem>>, vector<256x128xf32>
    tpu.vector_store %arg4[%c0_16, %c0_17], %20 {strides = array<i32>} : memref<256x128xf32, #tpu.memory_space<vmem>>, vector<256x128xf32>,
    return
  }
  func.func @transform_0(%arg0: i32) -> (i32, i32, i32) {
    %c0_i32 = arith.constant 0 : i32
    %c0_i32_0 = arith.constant 0 : i32
    %c0_i32_1 = arith.constant 0 : i32
    return %c0_i32, %arg0, %c0_i32_0 : i32, i32, i32
  }
  func.func @transform_1(%arg0: i32) -> (i32, i32) {
    %c0_i32 = arith.constant 0 : i32
    %c0_i32_0 = arith.constant 0 : i32
    %c0_i32_1 = arith.constant 0 : i32
    return %c0_i32, %c0_i32_0 : i32, i32
  }
  func.func @transform_2(%arg0: i32) -> (i32, i32) {
    %c0_i32 = arith.constant 0 : i32
    %c0_i32_0 = arith.constant 0 : i32
    %c0_i32_1 = arith.constant 0 : i32
    return %c0_i32, %c0_i32_0 : i32, i32
  }
  func.func @transform_3(%arg0: i32) -> (i32, i32) {
    %c0_i32 = arith.constant 0 : i32
    %c0_i32_0 = arith.constant 0 : i32
    return %arg0, %c0_i32 : i32, i32
  }
}

module attributes {stable_mosaic.version = 11 : i64} {
  func.func @_conv_relu_pool_kernel(%arg0: i32, %arg1: memref<4x56x256xf32, #tpu.memory_space<vmem>>, %arg2: memref<256x128xf32, #tpu.memory_space<vmem>>, %arg3: memref<1x128xf32, #tpu.memory_space<vmem>>, %arg4: memref<56x128xf32, #tpu.memory_space<vmem>>) attributes {dimension_semantics = [#tpu.dimension_semantics<parallel>], iteration_bounds = array<i64: 1>, scalar_prefetch = 0 : i64, scratch_operands = 0 : i64, tpu.core_type = #tpu.core_type<tc>, window_params = [{transform_indices = @transform_0, window_bounds = array<i64: 4, 56, 256>}, {pipeline_mode = #tpu.pipeline_mode<synchronous>, transform_indices = @transform_1, window_bounds = array<i64: 256, 128>}, {pipeline_mode = #tpu.pipeline_mode<synchronous>, transform_indices = @transform_2, window_bounds = array<i64: 1, 128>}, {transform_indices = @transform_3, window_bounds = array<i64: 56, 128>}]} {
    %c0 = arith.constant 0 : index
    %c0_0 = arith.constant 0 : index
    %0 = vector.load %arg2[%c0, %c0_0] : memref<256x128xf32, #tpu.memory_space<vmem>>, vector<256x128xf32>
    %c0_1 = arith.constant 0 : index
    %c0_2 = arith.constant 0 : index
    %c0_3 = arith.constant 0 : index
    %1 = vector.load %arg1[%c0_1, %c0_2, %c0_3] : memref<4x56x256xf32, #tpu.memory_space<vmem>>, vector<1x56x256xf32>
    %2 = vector.shape_cast %1 : vector<1x56x256xf32> to vector<56x256xf32>
    %cst = arith.constant dense<0.000000e+00> : vector<56x128xf32>
    %3 = tpu.matmul %2, %0, %cst {dimension_numbers = #tpu.dot_dimension_numbers<[1], [0], [0], [1], [0, 0, 1, 1], [], []>} : vector<56x256xf32>, vector<256x128xf32>, vector<56x128xf32> -> vector<56x128xf32>
    %c1 = arith.constant 1 : index
    %c0_4 = arith.constant 0 : index
    %c0_5 = arith.constant 0 : index
    %4 = vector.load %arg1[%c1, %c0_4, %c0_5] : memref<4x56x256xf32, #tpu.memory_space<vmem>>, vector<1x56x256xf32>
    %5 = vector.shape_cast %4 : vector<1x56x256xf32> to vector<56x256xf32>
    %cst_6 = arith.constant dense<0.000000e+00> : vector<56x128xf32>
    %6 = tpu.matmul %5, %0, %cst_6 {dimension_numbers = #tpu.dot_dimension_numbers<[1], [0], [0], [1], [0, 0, 1, 1], [], []>} : vector<56x256xf32>, vector<256x128xf32>, vector<56x128xf32> -> vector<56x128xf32>
    %7 = arith.maximumf %3, %6 : vector<56x128xf32>
    %c2 = arith.constant 2 : index
    %c0_7 = arith.constant 0 : index
    %c0_8 = arith.constant 0 : index
    %8 = vector.load %arg1[%c2, %c0_7, %c0_8] : memref<4x56x256xf32, #tpu.memory_space<vmem>>, vector<1x56x256xf32>
    %9 = vector.shape_cast %8 : vector<1x56x256xf32> to vector<56x256xf32>
    %cst_9 = arith.constant dense<0.000000e+00> : vector<56x128xf32>
    %10 = tpu.matmul %9, %0, %cst_9 {dimension_numbers = #tpu.dot_dimension_numbers<[1], [0], [0], [1], [0, 0, 1, 1], [], []>} : vector<56x256xf32>, vector<256x128xf32>, vector<56x128xf32> -> vector<56x128xf32>
    %11 = arith.maximumf %7, %10 : vector<56x128xf32>
    %c3 = arith.constant 3 : index
    %c0_10 = arith.constant 0 : index
    %c0_11 = arith.constant 0 : index
    %12 = vector.load %arg1[%c3, %c0_10, %c0_11] : memref<4x56x256xf32, #tpu.memory_space<vmem>>, vector<1x56x256xf32>
    %13 = vector.shape_cast %12 : vector<1x56x256xf32> to vector<56x256xf32>
    %cst_12 = arith.constant dense<0.000000e+00> : vector<56x128xf32>
    %14 = tpu.matmul %13, %0, %cst_12 {dimension_numbers = #tpu.dot_dimension_numbers<[1], [0], [0], [1], [0, 0, 1, 1], [], []>} : vector<56x256xf32>, vector<256x128xf32>, vector<56x128xf32> -> vector<56x128xf32>
    %15 = arith.maximumf %11, %14 : vector<56x128xf32>
    %c0_13 = arith.constant 0 : index
    %c0_14 = arith.constant 0 : index
    %16 = vector.load %arg3[%c0_13, %c0_14] : memref<1x128xf32, #tpu.memory_space<vmem>>, vector<1x128xf32>
    %17 = vector.broadcast %16 : vector<1x128xf32> to vector<56x128xf32>
    %18 = arith.addf %15, %17 : vector<56x128xf32>
    %cst_15 = arith.constant 0.000000e+00 : f32
    %19 = vector.broadcast %cst_15 : f32 to vector<56x128xf32>
    %20 = arith.maximumf %18, %19 : vector<56x128xf32>
    %c0_16 = arith.constant 0 : index
    %c0_17 = arith.constant 0 : index
    %21 = vector.load %arg4[%c0_16, %c0_17] : memref<56x128xf32, #tpu.memory_space<vmem>>, vector<56x128xf32>
    tpu.vector_store %arg4[%c0_16, %c0_17], %20 {strides = array<i32>} : memref<56x128xf32, #tpu.memory_space<vmem>>, vector<56x128xf32>,
    return
  }
  func.func @transform_0(%arg0: i32) -> (i32, i32, i32) {
    %c0_i32 = arith.constant 0 : i32
    %c0_i32_0 = arith.constant 0 : i32
    %c0_i32_1 = arith.constant 0 : i32
    return %c0_i32, %arg0, %c0_i32_0 : i32, i32, i32
  }
  func.func @transform_1(%arg0: i32) -> (i32, i32) {
    %c0_i32 = arith.constant 0 : i32
    %c0_i32_0 = arith.constant 0 : i32
    %c0_i32_1 = arith.constant 0 : i32
    return %c0_i32, %c0_i32_0 : i32, i32
  }
  func.func @transform_2(%arg0: i32) -> (i32, i32) {
    %c0_i32 = arith.constant 0 : i32
    %c0_i32_0 = arith.constant 0 : i32
    %c0_i32_1 = arith.constant 0 : i32
    return %c0_i32, %c0_i32_0 : i32, i32
  }
  func.func @transform_3(%arg0: i32) -> (i32, i32) {
    %c0_i32 = arith.constant 0 : i32
    %c0_i32_0 = arith.constant 0 : i32
    return %arg0, %c0_i32 : i32, i32
  }
}

module attributes {stable_mosaic.version = 11 : i64} {
  func.func @_mlp_head_kernel(%arg0: i32, %arg1: memref<8x512xf32, #tpu.memory_space<vmem>>, %arg2: memref<512x128xf32, #tpu.memory_space<vmem>>, %arg3: memref<1x128xf32, #tpu.memory_space<vmem>>, %arg4: memref<128x128xf32, #tpu.memory_space<vmem>>, %arg5: memref<1x128xf32, #tpu.memory_space<vmem>>, %arg6: memref<128x128xf32, #tpu.memory_space<vmem>>, %arg7: memref<1x128xf32, #tpu.memory_space<vmem>>, %arg8: memref<8x128xf32, #tpu.memory_space<vmem>>) attributes {dimension_semantics = [#tpu.dimension_semantics<parallel>], iteration_bounds = array<i64: 1>, scalar_prefetch = 0 : i64, scratch_operands = 0 : i64, tpu.core_type = #tpu.core_type<tc>, window_params = [{transform_indices = @transform_0, window_bounds = array<i64: 8, 512>}, {pipeline_mode = #tpu.pipeline_mode<synchronous>, transform_indices = @transform_1, window_bounds = array<i64: 512, 128>}, {pipeline_mode = #tpu.pipeline_mode<synchronous>, transform_indices = @transform_2, window_bounds = array<i64: 1, 128>}, {pipeline_mode = #tpu.pipeline_mode<synchronous>, transform_indices = @transform_3, window_bounds = array<i64: 128, 128>}, {pipeline_mode = #tpu.pipeline_mode<synchronous>, transform_indices = @transform_4, window_bounds = array<i64: 1, 128>}, {pipeline_mode = #tpu.pipeline_mode<synchronous>, transform_indices = @transform_5, window_bounds = array<i64: 128, 128>}, {pipeline_mode = #tpu.pipeline_mode<synchronous>, transform_indices = @transform_6, window_bounds = array<i64: 1, 128>}, {transform_indices = @transform_7, window_bounds = array<i64: 8, 128>}]} {
    %c0 = arith.constant 0 : index
    %c0_0 = arith.constant 0 : index
    %0 = vector.load %arg1[%c0, %c0_0] : memref<8x512xf32, #tpu.memory_space<vmem>>, vector<8x512xf32>
    %c0_1 = arith.constant 0 : index
    %c0_2 = arith.constant 0 : index
    %1 = vector.load %arg2[%c0_1, %c0_2] : memref<512x128xf32, #tpu.memory_space<vmem>>, vector<512x128xf32>
    %cst = arith.constant dense<0.000000e+00> : vector<8x128xf32>
    %2 = tpu.matmul %0, %1, %cst {dimension_numbers = #tpu.dot_dimension_numbers<[1], [0], [0], [1], [0, 0, 1, 1], [], []>} : vector<8x512xf32>, vector<512x128xf32>, vector<8x128xf32> -> vector<8x128xf32>
    %c0_3 = arith.constant 0 : index
    %c0_4 = arith.constant 0 : index
    %3 = vector.load %arg3[%c0_3, %c0_4] : memref<1x128xf32, #tpu.memory_space<vmem>>, vector<1x128xf32>
    %4 = vector.broadcast %3 : vector<1x128xf32> to vector<8x128xf32>
    %5 = arith.addf %2, %4 : vector<8x128xf32>
    %cst_5 = arith.constant 0.000000e+00 : f32
    %6 = vector.broadcast %cst_5 : f32 to vector<8x128xf32>
    %7 = arith.maximumf %5, %6 : vector<8x128xf32>
    %c0_6 = arith.constant 0 : index
    %c0_7 = arith.constant 0 : index
    %8 = vector.load %arg4[%c0_6, %c0_7] : memref<128x128xf32, #tpu.memory_space<vmem>>, vector<128x128xf32>
    %cst_8 = arith.constant dense<0.000000e+00> : vector<8x128xf32>
    %9 = tpu.matmul %7, %8, %cst_8 {dimension_numbers = #tpu.dot_dimension_numbers<[1], [0], [0], [1], [0, 0, 1, 1], [], []>} : vector<8x128xf32>, vector<128x128xf32>, vector<8x128xf32> -> vector<8x128xf32>
    %c0_9 = arith.constant 0 : index
    %c0_10 = arith.constant 0 : index
    %10 = vector.load %arg5[%c0_9, %c0_10] : memref<1x128xf32, #tpu.memory_space<vmem>>, vector<1x128xf32>
    %11 = vector.broadcast %10 : vector<1x128xf32> to vector<8x128xf32>
    %12 = arith.addf %9, %11 : vector<8x128xf32>
    %cst_11 = arith.constant 0.000000e+00 : f32
    %13 = vector.broadcast %cst_11 : f32 to vector<8x128xf32>
    %14 = arith.maximumf %12, %13 : vector<8x128xf32>
    %c0_12 = arith.constant 0 : index
    %c0_13 = arith.constant 0 : index
    %15 = vector.load %arg6[%c0_12, %c0_13] : memref<128x128xf32, #tpu.memory_space<vmem>>, vector<128x128xf32>
    %cst_14 = arith.constant dense<0.000000e+00> : vector<8x128xf32>
    %16 = tpu.matmul %14, %15, %cst_14 {dimension_numbers = #tpu.dot_dimension_numbers<[1], [0], [0], [1], [0, 0, 1, 1], [], []>} : vector<8x128xf32>, vector<128x128xf32>, vector<8x128xf32> -> vector<8x128xf32>
    %c0_15 = arith.constant 0 : index
    %c0_16 = arith.constant 0 : index
    %17 = vector.load %arg7[%c0_15, %c0_16] : memref<1x128xf32, #tpu.memory_space<vmem>>, vector<1x128xf32>
    %18 = vector.broadcast %17 : vector<1x128xf32> to vector<8x128xf32>
    %19 = arith.addf %16, %18 : vector<8x128xf32>
    %c0_17 = arith.constant 0 : index
    %c0_18 = arith.constant 0 : index
    %20 = vector.load %arg8[%c0_17, %c0_18] : memref<8x128xf32, #tpu.memory_space<vmem>>, vector<8x128xf32>
    tpu.vector_store %arg8[%c0_17, %c0_18], %19 {strides = array<i32>} : memref<8x128xf32, #tpu.memory_space<vmem>>, vector<8x128xf32>,
    return
  }
  func.func @transform_0(%arg0: i32) -> (i32, i32) {
    %c0_i32 = arith.constant 0 : i32
    %c0_i32_0 = arith.constant 0 : i32
    return %arg0, %c0_i32 : i32, i32
  }
  func.func @transform_1(%arg0: i32) -> (i32, i32) {
    %c0_i32 = arith.constant 0 : i32
    %c0_i32_0 = arith.constant 0 : i32
    %c0_i32_1 = arith.constant 0 : i32
    return %c0_i32, %c0_i32_0 : i32, i32
  }
  func.func @transform_2(%arg0: i32) -> (i32, i32) {
    %c0_i32 = arith.constant 0 : i32
    %c0_i32_0 = arith.constant 0 : i32
    %c0_i32_1 = arith.constant 0 : i32
    return %c0_i32, %c0_i32_0 : i32, i32
  }
  func.func @transform_3(%arg0: i32) -> (i32, i32) {
    %c0_i32 = arith.constant 0 : i32
    %c0_i32_0 = arith.constant 0 : i32
    %c0_i32_1 = arith.constant 0 : i32
    return %c0_i32, %c0_i32_0 : i32, i32
  }
  func.func @transform_4(%arg0: i32) -> (i32, i32) {
    %c0_i32 = arith.constant 0 : i32
    %c0_i32_0 = arith.constant 0 : i32
    %c0_i32_1 = arith.constant 0 : i32
    return %c0_i32, %c0_i32_0 : i32, i32
  }
  func.func @transform_5(%arg0: i32) -> (i32, i32) {
    %c0_i32 = arith.constant 0 : i32
    %c0_i32_0 = arith.constant 0 : i32
    %c0_i32_1 = arith.constant 0 : i32
    return %c0_i32, %c0_i32_0 : i32, i32
  }
  func.func @transform_6(%arg0: i32) -> (i32, i32) {
    %c0_i32 = arith.constant 0 : i32
    %c0_i32_0 = arith.constant 0 : i32
    %c0_i32_1 = arith.constant 0 : i32
    return %c0_i32, %c0_i32_0 : i32, i32
  }
  func.func @transform_7(%arg0: i32) -> (i32, i32) {
    %c0_i32 = arith.constant 0 : i32
    %c0_i32_0 = arith.constant 0 : i32
    return %arg0, %c0_i32 : i32, i32
  }
}

</mosaic_0001>

<bundles_post_ra>
// kernel: convnet_forward.3
= control target key start
LH: loop header
LB: loop body
LE: loop exit
PB: predicated region body
PF: predicated region fallthrough
CT: control target
= control target key end

     0   :  { %s1753_s12 = smov 0   ;;  %s1755_s13 = smov 0   ;;  %s2314_s0 = inlined_call_operand.vmem [shape: f32[4,512,128], index: 0, kind: input, shape index: {}]   ;;  %s2315_s1 = inlined_call_operand.vmem [shape: f32[128,128], index: 1, kind: input, shape index: {}]   ;;  %s2316_s2 = inlined_call_operand.vmem [shape: f32[1,128], index: 2, kind: input, shape index: {}]   ;;  %s2317_s3 = inlined_call_operand.vmem [shape: f32[512,128], index: 3, kind: output, shape index: {}]  }
   0x1   :  { %s1757_s14 = smov 0  }
   0x2 LB: > { %s1574_s15 = sadd.s32 4294967295, %s1731_s14   ;;  %s1770_s16 = sadd.s32 1, %s1731_s14   ;;  %s1731_s14 = sphi %s1757_s14, %s2320_s14   ;;  %s1727_s13 = sphi %s1755_s13, %s2319_s13   ;;  %s1723_s12 = sphi %s1753_s12, %s2318_s12  }
   0x3   : > { %s17_s17 = ssub.s32 %s1731_s14, %s1770_s16  ;;  %s20_s18 = sadd.s32 1, %s1727_s13 }
   0x4   : > { %p18_p0 = scmp.eq.s32.totalorder %s17_s17, 0  ;;  %p27_p1 = scmp.ne.s32.totalorder %s1727_s13, %s1723_s12 }
   0x5   : > { %p28_p2 = scmp.eq.s32.totalorder %s1731_s14, 0  ;;  %p1577_p4 = scmp.ge.s32.totalorder %s1731_s14, 2 }
   0x6   : > { %s1779_s19 = scalar_select %p18_p0, %s1727_s13, %s20_s18  }
   0x7   : > { %p29_p3 = por %p28_p2, %p27_p1  ;;  %127 = sbr.rel (%p1577_p4) target bundleno = 144 (0x90), region = 24 }
   0xc   : > { %130 = sbr.rel (!%p29_p3) target bundleno = 144 (0x90), region = 28  ;;  %s132_s20 = sand.u32 (%p29_p3), 1, %s1727_s13  }
   0xd   : > { %s1683_s21 = sshll.u32 (%p29_p3), %s1731_s14, 8  ;;  %s1578_s22 = sshll.u32 (%p29_p3), %s132_s20, 10 }
   0xe   : > { %s1787_s25 = scalar_lea.vmem (%p29_p3), %s2314_s0, %s1683_s21  ;;  %s1792_s26 = scalar_lea.vmem (%p29_p3), [#allocation2], %s1578_s22 }
   0xf   : > { %v420_v0 = vld [vmem:[%s1787_s25] sm:$0xff] (%p29_p3)  ;;  %v422_v1 = vld [vmem:[%s1787_s25 + $0x8] sm:$0xff] (%p29_p3)  ;;  %v424_v2 = vld [vmem:[%s1787_s25 + $0x10] sm:$0xff] (%p29_p3) }
  0x10   : > { %421 = vst [vmem:[%s1792_s26] sm:$0xff] (%p29_p3), %v420_v0  ;;  %v426_v3 = vld [vmem:[%s1787_s25 + $0x18] sm:$0xff] (%p29_p3)  ;;  %v428_v4 = vld [vmem:[%s1787_s25 + $0x20] sm:$0xff] (%p29_p3)  ;;  %v430_v5 = vld [vmem:[%s1787_s25 + $0x28] sm:$0xff] (%p29_p3) }
  0x11   : > { %423 = vst [vmem:[%s1792_s26 + $0x8] sm:$0xff] %v422_v1  ;;  %v432_v6 = vld [vmem:[%s1787_s25 + $0x30] sm:$0xff]  ;;  %v434_v7 = vld [vmem:[%s1787_s25 + $0x38] sm:$0xff]  ;;  %v436_v8 = vld [vmem:[%s1787_s25 + $0x40] sm:$0xff] }
  0x12   : > { %425 = vst [vmem:[%s1792_s26 + $0x10] sm:$0xff] %v424_v2  ;;  %v438_v9 = vld [vmem:[%s1787_s25 + $0x48] sm:$0xff]  ;;  %v440_v10 = vld [vmem:[%s1787_s25 + $0x50] sm:$0xff]  ;;  %v442_v11 = vld [vmem:[%s1787_s25 + $0x58] sm:$0xff] }
  0x13   : > { %427 = vst [vmem:[%s1792_s26 + $0x18] sm:$0xff] %v426_v3  ;;  %v444_v12 = vld [vmem:[%s1787_s25 + $0x60] sm:$0xff]  ;;  %v446_v13 = vld [vmem:[%s1787_s25 + $0x68] sm:$0xff]  ;;  %v448_v14 = vld [vmem:[%s1787_s25 + $0x70] sm:$0xff] }
  0x14   : > { %429 = vst [vmem:[%s1792_s26 + $0x20] sm:$0xff] %v428_v4  ;;  %v450_v15 = vld [vmem:[%s1787_s25 + $0x78] sm:$0xff]  ;;  %v452_v16 = vld [vmem:[%s1787_s25 + $0x80] sm:$0xff]  ;;  %v454_v17 = vld [vmem:[%s1787_s25 + $0x88] sm:$0xff] }
  0x15   : > { %431 = vst [vmem:[%s1792_s26 + $0x28] sm:$0xff] %v430_v5  ;;  %v456_v18 = vld [vmem:[%s1787_s25 + $0x90] sm:$0xff]  ;;  %v458_v19 = vld [vmem:[%s1787_s25 + $0x98] sm:$0xff]  ;;  %v460_v20 = vld [vmem:[%s1787_s25 + $0xa0] sm:$0xff] }
  0x16   : > { %433 = vst [vmem:[%s1792_s26 + $0x30] sm:$0xff] %v432_v6  ;;  %v462_v21 = vld [vmem:[%s1787_s25 + $0xa8] sm:$0xff]  ;;  %v464_v22 = vld [vmem:[%s1787_s25 + $0xb0] sm:$0xff]  ;;  %v466_v23 = vld [vmem:[%s1787_s25 + $0xb8] sm:$0xff] }
  0x17   : > { %435 = vst [vmem:[%s1792_s26 + $0x38] sm:$0xff] %v434_v7  ;;  %v468_v24 = vld [vmem:[%s1787_s25 + $0xc0] sm:$0xff]  ;;  %v470_v25 = vld [vmem:[%s1787_s25 + $0xc8] sm:$0xff]  ;;  %v472_v26 = vld [vmem:[%s1787_s25 + $0xd0] sm:$0xff] }
  0x18   : > { %437 = vst [vmem:[%s1792_s26 + $0x40] sm:$0xff] %v436_v8  ;;  %v474_v27 = vld [vmem:[%s1787_s25 + $0xd8] sm:$0xff]  ;;  %v476_v28 = vld [vmem:[%s1787_s25 + $0xe0] sm:$0xff]  ;;  %v478_v29 = vld [vmem:[%s1787_s25 + $0xe8] sm:$0xff] }
  0x19   : > { %439 = vst [vmem:[%s1792_s26 + $0x48] sm:$0xff] %v438_v9  ;;  %v480_v30 = vld [vmem:[%s1787_s25 + $0xf0] sm:$0xff]  ;;  %v482_v31 = vld [vmem:[%s1787_s25 + $0xf8] sm:$0xff]  ;;  %v484_v32 = vld [vmem:[%s1787_s25 + $0x200] sm:$0xff] }
  0x1a   : > { %441 = vst [vmem:[%s1792_s26 + $0x50] sm:$0xff] %v440_v10  ;;  %v486_v33 = vld [vmem:[%s1787_s25 + $0x208] sm:$0xff]  ;;  %v488_v34 = vld [vmem:[%s1787_s25 + $0x210] sm:$0xff]  ;;  %v490_v35 = vld [vmem:[%s1787_s25 + $0x218] sm:$0xff] }
  0x1b   : > { %443 = vst [vmem:[%s1792_s26 + $0x58] sm:$0xff] %v442_v11  ;;  %v492_v36 = vld [vmem:[%s1787_s25 + $0x220] sm:$0xff]  ;;  %v494_v37 = vld [vmem:[%s1787_s25 + $0x228] sm:$0xff]  ;;  %v496_v38 = vld [vmem:[%s1787_s25 + $0x230] sm:$0xff] }
  0x1c   : > { %445 = vst [vmem:[%s1792_s26 + $0x60] sm:$0xff] %v444_v12  ;;  %v498_v39 = vld [vmem:[%s1787_s25 + $0x238] sm:$0xff]  ;;  %v500_v40 = vld [vmem:[%s1787_s25 + $0x240] sm:$0xff]  ;;  %v502_v41 = vld [vmem:[%s1787_s25 + $0x248] sm:$0xff] }
  0x1d   : > { %447 = vst [vmem:[%s1792_s26 + $0x68] sm:$0xff] %v446_v13  ;;  %v504_v42 = vld [vmem:[%s1787_s25 + $0x250] sm:$0xff]  ;;  %v506_v43 = vld [vmem:[%s1787_s25 + $0x258] sm:$0xff]  ;;  %v508_v44 = vld [vmem:[%s1787_s25 + $0x260] sm:$0xff] }
  0x1e   : > { %449 = vst [vmem:[%s1792_s26 + $0x70] sm:$0xff] %v448_v14  ;;  %v510_v45 = vld [vmem:[%s1787_s25 + $0x268] sm:$0xff]  ;;  %v512_v46 = vld [vmem:[%s1787_s25 + $0x270] sm:$0xff]  ;;  %v514_v47 = vld [vmem:[%s1787_s25 + $0x278] sm:$0xff] }
  0x1f   : > { %451 = vst [vmem:[%s1792_s26 + $0x78] sm:$0xff] %v450_v15  ;;  %v516_v48 = vld [vmem:[%s1787_s25 + $0x280] sm:$0xff]  ;;  %v518_v49 = vld [vmem:[%s1787_s25 + $0x288] sm:$0xff]  ;;  %v520_v50 = vld [vmem:[%s1787_s25 + $0x290] sm:$0xff] }
  0x20   : > { %453 = vst [vmem:[%s1792_s26 + $0x80] sm:$0xff] %v452_v16  ;;  %v522_v51 = vld [vmem:[%s1787_s25 + $0x298] sm:$0xff]  ;;  %v524_v52 = vld [vmem:[%s1787_s25 + $0x2a0] sm:$0xff]  ;;  %v526_v53 = vld [vmem:[%s1787_s25 + $0x2a8] sm:$0xff] }
  0x21   : > { %455 = vst [vmem:[%s1792_s26 + $0x88] sm:$0xff] %v454_v17  ;;  %v528_v54 = vld [vmem:[%s1787_s25 + $0x2b0] sm:$0xff]  ;;  %v530_v55 = vld [vmem:[%s1787_s25 + $0x2b8] sm:$0xff]  ;;  %v532_v56 = vld [vmem:[%s1787_s25 + $0x2c0] sm:$0xff] }
  0x22   : > { %457 = vst [vmem:[%s1792_s26 + $0x90] sm:$0xff] %v456_v18  ;;  %v534_v57 = vld [vmem:[%s1787_s25 + $0x2c8] sm:$0xff]  ;;  %v536_v58 = vld [vmem:[%s1787_s25 + $0x2d0] sm:$0xff]  ;;  %v538_v59 = vld [vmem:[%s1787_s25 + $0x2d8] sm:$0xff] }
  0x23   : > { %459 = vst [vmem:[%s1792_s26 + $0x98] sm:$0xff] %v458_v19  ;;  %v540_v60 = vld [vmem:[%s1787_s25 + $0x2e0] sm:$0xff]  ;;  %v542_v61 = vld [vmem:[%s1787_s25 + $0x2e8] sm:$0xff]  ;;  %v544_v62 = vld [vmem:[%s1787_s25 + $0x2f0] sm:$0xff] }
  0x24   : > { %461 = vst [vmem:[%s1792_s26 + $0xa0] sm:$0xff] %v460_v20  ;;  %v546_v63 = vld [vmem:[%s1787_s25 + $0x2f8] sm:$0xff]  ;;  %v548_v0 = vld [vmem:[%s1787_s25 + $0x400] sm:$0xff]  ;;  %v550_v1 = vld [vmem:[%s1787_s25 + $0x408] sm:$0xff] }
  0x25   : > { %463 = vst [vmem:[%s1792_s26 + $0xa8] sm:$0xff] %v462_v21  ;;  %v552_v2 = vld [vmem:[%s1787_s25 + $0x410] sm:$0xff]  ;;  %v554_v3 = vld [vmem:[%s1787_s25 + $0x418] sm:$0xff]  ;;  %v556_v4 = vld [vmem:[%s1787_s25 + $0x420] sm:$0xff] }
  0x26   : > { %465 = vst [vmem:[%s1792_s26 + $0xb0] sm:$0xff] %v464_v22  ;;  %v558_v5 = vld [vmem:[%s1787_s25 + $0x428] sm:$0xff]  ;;  %v560_v6 = vld [vmem:[%s1787_s25 + $0x430] sm:$0xff]  ;;  %v562_v7 = vld [vmem:[%s1787_s25 + $0x438] sm:$0xff] }
  0x27   : > { %467 = vst [vmem:[%s1792_s26 + $0xb8] sm:$0xff] %v466_v23  ;;  %v564_v8 = vld [vmem:[%s1787_s25 + $0x440] sm:$0xff]  ;;  %v566_v9 = vld [vmem:[%s1787_s25 + $0x448] sm:$0xff]  ;;  %v568_v10 = vld [vmem:[%s1787_s25 + $0x450] sm:$0xff] }
  0x28   : > { %469 = vst [vmem:[%s1792_s26 + $0xc0] sm:$0xff] %v468_v24  ;;  %v570_v11 = vld [vmem:[%s1787_s25 + $0x458] sm:$0xff]  ;;  %v572_v12 = vld [vmem:[%s1787_s25 + $0x460] sm:$0xff]  ;;  %v574_v13 = vld [vmem:[%s1787_s25 + $0x468] sm:$0xff] }
  0x29   : > { %471 = vst [vmem:[%s1792_s26 + $0xc8] sm:$0xff] %v470_v25  ;;  %v576_v14 = vld [vmem:[%s1787_s25 + $0x470] sm:$0xff]  ;;  %v578_v15 = vld [vmem:[%s1787_s25 + $0x478] sm:$0xff]  ;;  %v580_v16 = vld [vmem:[%s1787_s25 + $0x480] sm:$0xff] }
  0x2a   : > { %473 = vst [vmem:[%s1792_s26 + $0xd0] sm:$0xff] %v472_v26  ;;  %v582_v17 = vld [vmem:[%s1787_s25 + $0x488] sm:$0xff]  ;;  %v584_v18 = vld [vmem:[%s1787_s25 + $0x490] sm:$0xff]  ;;  %v586_v19 = vld [vmem:[%s1787_s25 + $0x498] sm:$0xff] }
  0x2b   : > { %475 = vst [vmem:[%s1792_s26 + $0xd8] sm:$0xff] %v474_v27  ;;  %v588_v20 = vld [vmem:[%s1787_s25 + $0x4a0] sm:$0xff]  ;;  %v590_v21 = vld [vmem:[%s1787_s25 + $0x4a8] sm:$0xff]  ;;  %v592_v22 = vld [vmem:[%s1787_s25 + $0x4b0] sm:$0xff] }
  0x2c   : > { %477 = vst [vmem:[%s1792_s26 + $0xe0] sm:$0xff] %v476_v28  ;;  %v594_v23 = vld [vmem:[%s1787_s25 + $0x4b8] sm:$0xff]  ;;  %v596_v24 = vld [vmem:[%s1787_s25 + $0x4c0] sm:$0xff]  ;;  %v598_v25 = vld [vmem:[%s1787_s25 + $0x4c8] sm:$0xff] }
  0x2d   : > { %479 = vst [vmem:[%s1792_s26 + $0xe8] sm:$0xff] %v478_v29  ;;  %v600_v26 = vld [vmem:[%s1787_s25 + $0x4d0] sm:$0xff]  ;;  %v602_v27 = vld [vmem:[%s1787_s25 + $0x4d8] sm:$0xff]  ;;  %v604_v28 = vld [vmem:[%s1787_s25 + $0x4e0] sm:$0xff] }
  0x2e   : > { %481 = vst [vmem:[%s1792_s26 + $0xf0] sm:$0xff] %v480_v30  ;;  %v606_v29 = vld [vmem:[%s1787_s25 + $0x4e8] sm:$0xff]  ;;  %v608_v30 = vld [vmem:[%s1787_s25 + $0x4f0] sm:$0xff] }
  0x2f   : > { %483 = vst [vmem:[%s1792_s26 + $0xf8] sm:$0xff] %v482_v31  ;;  %v610_v31 = vld [vmem:[%s1787_s25 + $0x4f8] sm:$0xff] }
  0x30   : > { %485 = vst [vmem:[%s1792_s26 + $0x100] sm:$0xff] %v484_v32  ;;  %v612_v32 = vld [vmem:[%s1787_s25 + $0x600] sm:$0xff] }
  0x31   : > { %487 = vst [vmem:[%s1792_s26 + $0x108] sm:$0xff] %v486_v33  ;;  %v614_v33 = vld [vmem:[%s1787_s25 + $0x608] sm:$0xff] }
  0x32   : > { %489 = vst [vmem:[%s1792_s26 + $0x110] sm:$0xff] %v488_v34  ;;  %v616_v34 = vld [vmem:[%s1787_s25 + $0x610] sm:$0xff] }
  0x33   : > { %491 = vst [vmem:[%s1792_s26 + $0x118] sm:$0xff] %v490_v35  ;;  %v618_v35 = vld [vmem:[%s1787_s25 + $0x618] sm:$0xff] }
  0x34   : > { %493 = vst [vmem:[%s1792_s26 + $0x120] sm:$0xff] %v492_v36  ;;  %v620_v36 = vld [vmem:[%s1787_s25 + $0x620] sm:$0xff] }
  0x35   : > { %495 = vst [vmem:[%s1792_s26 + $0x128] sm:$0xff] %v494_v37  ;;  %v622_v37 = vld [vmem:[%s1787_s25 + $0x628] sm:$0xff] }
  0x36   : > { %497 = vst [vmem:[%s1792_s26 + $0x130] sm:$0xff] %v496_v38  ;;  %v624_v38 = vld [vmem:[%s1787_s25 + $0x630] sm:$0xff] }
  0x37   : > { %499 = vst [vmem:[%s1792_s26 + $0x138] sm:$0xff] %v498_v39  ;;  %v626_v39 = vld [vmem:[%s1787_s25 + $0x638] sm:$0xff] }
  0x38   : > { %501 = vst [vmem:[%s1792_s26 + $0x140] sm:$0xff] %v500_v40  ;;  %v628_v40 = vld [vmem:[%s1787_s25 + $0x640] sm:$0xff] }
  0x39   : > { %503 = vst [vmem:[%s1792_s26 + $0x148] sm:$0xff] %v502_v41  ;;  %v630_v41 = vld [vmem:[%s1787_s25 + $0x648] sm:$0xff] }
  0x3a   : > { %505 = vst [vmem:[%s1792_s26 + $0x150] sm:$0xff] %v504_v42  ;;  %v632_v42 = vld [vmem:[%s1787_s25 + $0x650] sm:$0xff] }
  0x3b   : > { %507 = vst [vmem:[%s1792_s26 + $0x158] sm:$0xff] %v506_v43  ;;  %v634_v43 = vld [vmem:[%s1787_s25 + $0x658] sm:$0xff] }
  0x3c   : > { %509 = vst [vmem:[%s1792_s26 + $0x160] sm:$0xff] %v508_v44  ;;  %v636_v44 = vld [vmem:[%s1787_s25 + $0x660] sm:$0xff] }
  0x3d   : > { %511 = vst [vmem:[%s1792_s26 + $0x168] sm:$0xff] %v510_v45  ;;  %v638_v45 = vld [vmem:[%s1787_s25 + $0x668] sm:$0xff] }
  0x3e   : > { %513 = vst [vmem:[%s1792_s26 + $0x170] sm:$0xff] %v512_v46  ;;  %v640_v46 = vld [vmem:[%s1787_s25 + $0x670] sm:$0xff] }
  0x3f   : > { %515 = vst [vmem:[%s1792_s26 + $0x178] sm:$0xff] %v514_v47  ;;  %v642_v47 = vld [vmem:[%s1787_s25 + $0x678] sm:$0xff] }
  0x40   : > { %517 = vst [vmem:[%s1792_s26 + $0x180] sm:$0xff] %v516_v48  ;;  %v644_v48 = vld [vmem:[%s1787_s25 + $0x680] sm:$0xff] }
  0x41   : > { %519 = vst [vmem:[%s1792_s26 + $0x188] sm:$0xff] %v518_v49  ;;  %v646_v49 = vld [vmem:[%s1787_s25 + $0x688] sm:$0xff] }
  0x42   : > { %521 = vst [vmem:[%s1792_s26 + $0x190] sm:$0xff] %v520_v50  ;;  %v648_v50 = vld [vmem:[%s1787_s25 + $0x690] sm:$0xff] }
  0x43   : > { %523 = vst [vmem:[%s1792_s26 + $0x198] sm:$0xff] %v522_v51  ;;  %v650_v51 = vld [vmem:[%s1787_s25 + $0x698] sm:$0xff] }
  0x44   : > { %525 = vst [vmem:[%s1792_s26 + $0x1a0] sm:$0xff] %v524_v52  ;;  %v652_v52 = vld [vmem:[%s1787_s25 + $0x6a0] sm:$0xff] }
  0x45   : > { %527 = vst [vmem:[%s1792_s26 + $0x1a8] sm:$0xff] %v526_v53  ;;  %v654_v53 = vld [vmem:[%s1787_s25 + $0x6a8] sm:$0xff] }
  0x46   : > { %529 = vst [vmem:[%s1792_s26 + $0x1b0] sm:$0xff] %v528_v54  ;;  %v656_v54 = vld [vmem:[%s1787_s25 + $0x6b0] sm:$0xff] }
  0x47   : > { %531 = vst [vmem:[%s1792_s26 + $0x1b8] sm:$0xff] %v530_v55  ;;  %v658_v55 = vld [vmem:[%s1787_s25 + $0x6b8] sm:$0xff] }
  0x48   : > { %533 = vst [vmem:[%s1792_s26 + $0x1c0] sm:$0xff] %v532_v56  ;;  %v660_v56 = vld [vmem:[%s1787_s25 + $0x6c0] sm:$0xff] }
  0x49   : > { %535 = vst [vmem:[%s1792_s26 + $0x1c8] sm:$0xff] %v534_v57  ;;  %v662_v57 = vld [vmem:[%s1787_s25 + $0x6c8] sm:$0xff] }
  0x4a   : > { %537 = vst [vmem:[%s1792_s26 + $0x1d0] sm:$0xff] %v536_v58  ;;  %v664_v58 = vld [vmem:[%s1787_s25 + $0x6d0] sm:$0xff] }
  0x4b   : > { %539 = vst [vmem:[%s1792_s26 + $0x1d8] sm:$0xff] %v538_v59  ;;  %v666_v59 = vld [vmem:[%s1787_s25 + $0x6d8] sm:$0xff] }
  0x4c   : > { %541 = vst [vmem:[%s1792_s26 + $0x1e0] sm:$0xff] %v540_v60  ;;  %v668_v60 = vld [vmem:[%s1787_s25 + $0x6e0] sm:$0xff] }
  0x4d   : > { %543 = vst [vmem:[%s1792_s26 + $0x1e8] sm:$0xff] %v542_v61  ;;  %v670_v61 = vld [vmem:[%s1787_s25 + $0x6e8] sm:$0xff] }
  0x4e   : > { %545 = vst [vmem:[%s1792_s26 + $0x1f0] sm:$0xff] %v544_v62  ;;  %v672_v62 = vld [vmem:[%s1787_s25 + $0x6f0] sm:$0xff] }
  0x4f   : > { %547 = vst [vmem:[%s1792_s26 + $0x1f8] sm:$0xff] %v546_v63  ;;  %v674_v63 = vld [vmem:[%s1787_s25 + $0x6f8] sm:$0xff] }
  0x50   : > { %549 = vst [vmem:[%s1792_s26 + $0x200] sm:$0xff] %v548_v0 }
  0x51   : > { %551 = vst [vmem:[%s1792_s26 + $0x208] sm:$0xff] %v550_v1 }
  0x52   : > { %553 = vst [vmem:[%s1792_s26 + $0x210] sm:$0xff] %v552_v2 }
  0x53   : > { %555 = vst [vmem:[%s1792_s26 + $0x218] sm:$0xff] %v554_v3 }
  0x54   : > { %557 = vst [vmem:[%s1792_s26 + $0x220] sm:$0xff] %v556_v4 }
  0x55   : > { %559 = vst [vmem:[%s1792_s26 + $0x228] sm:$0xff] %v558_v5 }
  0x56   : > { %561 = vst [vmem:[%s1792_s26 + $0x230] sm:$0xff] %v560_v6 }
  0x57   : > { %563 = vst [vmem:[%s1792_s26 + $0x238] sm:$0xff] %v562_v7 }
  0x58   : > { %565 = vst [vmem:[%s1792_s26 + $0x240] sm:$0xff] %v564_v8 }
  0x59   : > { %567 = vst [vmem:[%s1792_s26 + $0x248] sm:$0xff] %v566_v9 }
  0x5a   : > { %569 = vst [vmem:[%s1792_s26 + $0x250] sm:$0xff] %v568_v10 }
  0x5b   : > { %571 = vst [vmem:[%s1792_s26 + $0x258] sm:$0xff] %v570_v11 }
  0x5c   : > { %573 = vst [vmem:[%s1792_s26 + $0x260] sm:$0xff] %v572_v12 }
  0x5d   : > { %575 = vst [vmem:[%s1792_s26 + $0x268] sm:$0xff] %v574_v13 }
  0x5e   : > { %577 = vst [vmem:[%s1792_s26 + $0x270] sm:$0xff] %v576_v14 }
  0x5f   : > { %579 = vst [vmem:[%s1792_s26 + $0x278] sm:$0xff] %v578_v15 }
  0x60   : > { %581 = vst [vmem:[%s1792_s26 + $0x280] sm:$0xff] %v580_v16 }
  0x61   : > { %583 = vst [vmem:[%s1792_s26 + $0x288] sm:$0xff] %v582_v17 }
  0x62   : > { %585 = vst [vmem:[%s1792_s26 + $0x290] sm:$0xff] %v584_v18 }
  0x63   : > { %587 = vst [vmem:[%s1792_s26 + $0x298] sm:$0xff] %v586_v19 }
  0x64   : > { %589 = vst [vmem:[%s1792_s26 + $0x2a0] sm:$0xff] %v588_v20 }
  0x65   : > { %591 = vst [vmem:[%s1792_s26 + $0x2a8] sm:$0xff] %v590_v21 }
  0x66   : > { %593 = vst [vmem:[%s1792_s26 + $0x2b0] sm:$0xff] %v592_v22 }
  0x67   : > { %595 = vst [vmem:[%s1792_s26 + $0x2b8] sm:$0xff] %v594_v23 }
  0x68   : > { %597 = vst [vmem:[%s1792_s26 + $0x2c0] sm:$0xff] %v596_v24 }
  0x69   : > { %599 = vst [vmem:[%s1792_s26 + $0x2c8] sm:$0xff] %v598_v25 }
  0x6a   : > { %601 = vst [vmem:[%s1792_s26 + $0x2d0] sm:$0xff] %v600_v26 }
  0x6b   : > { %603 = vst [vmem:[%s1792_s26 + $0x2d8] sm:$0xff] %v602_v27 }
  0x6c   : > { %605 = vst [vmem:[%s1792_s26 + $0x2e0] sm:$0xff] %v604_v28 }
  0x6d   : > { %607 = vst [vmem:[%s1792_s26 + $0x2e8] sm:$0xff] %v606_v29 }
  0x6e   : > { %609 = vst [vmem:[%s1792_s26 + $0x2f0] sm:$0xff] %v608_v30 }
  0x6f   : > { %611 = vst [vmem:[%s1792_s26 + $0x2f8] sm:$0xff] %v610_v31 }
  0x70   : > { %613 = vst [vmem:[%s1792_s26 + $0x300] sm:$0xff] %v612_v32 }
  0x71   : > { %615 = vst [vmem:[%s1792_s26 + $0x308] sm:$0xff] %v614_v33 }
  0x72   : > { %617 = vst [vmem:[%s1792_s26 + $0x310] sm:$0xff] %v616_v34 }
  0x73   : > { %619 = vst [vmem:[%s1792_s26 + $0x318] sm:$0xff] %v618_v35 }
  0x74   : > { %621 = vst [vmem:[%s1792_s26 + $0x320] sm:$0xff] %v620_v36 }
  0x75   : > { %623 = vst [vmem:[%s1792_s26 + $0x328] sm:$0xff] %v622_v37 }
  0x76   : > { %625 = vst [vmem:[%s1792_s26 + $0x330] sm:$0xff] %v624_v38 }
  0x77   : > { %627 = vst [vmem:[%s1792_s26 + $0x338] sm:$0xff] %v626_v39 }
  0x78   : > { %629 = vst [vmem:[%s1792_s26 + $0x340] sm:$0xff] %v628_v40 }
  0x79   : > { %631 = vst [vmem:[%s1792_s26 + $0x348] sm:$0xff] %v630_v41 }
  0x7a   : > { %633 = vst [vmem:[%s1792_s26 + $0x350] sm:$0xff] %v632_v42 }
  0x7b   : > { %635 = vst [vmem:[%s1792_s26 + $0x358] sm:$0xff] %v634_v43 }
  0x7c   : > { %637 = vst [vmem:[%s1792_s26 + $0x360] sm:$0xff] %v636_v44 }
  0x7d   : > { %639 = vst [vmem:[%s1792_s26 + $0x368] sm:$0xff] %v638_v45 }
  0x7e   : > { %641 = vst [vmem:[%s1792_s26 + $0x370] sm:$0xff] %v640_v46 }
  0x7f   : > { %643 = vst [vmem:[%s1792_s26 + $0x378] sm:$0xff] %v642_v47 }
  0x80   : > { %645 = vst [vmem:[%s1792_s26 + $0x380] sm:$0xff] %v644_v48 }
  0x81   : > { %647 = vst [vmem:[%s1792_s26 + $0x388] sm:$0xff] %v646_v49 }
  0x82   : > { %649 = vst [vmem:[%s1792_s26 + $0x390] sm:$0xff] %v648_v50 }
  0x83   : > { %651 = vst [vmem:[%s1792_s26 + $0x398] sm:$0xff] %v650_v51 }
  0x84   : > { %653 = vst [vmem:[%s1792_s26 + $0x3a0] sm:$0xff] %v652_v52 }
  0x85   : > { %655 = vst [vmem:[%s1792_s26 + $0x3a8] sm:$0xff] %v654_v53 }
  0x86   : > { %657 = vst [vmem:[%s1792_s26 + $0x3b0] sm:$0xff] %v656_v54 }
  0x87   : > { %659 = vst [vmem:[%s1792_s26 + $0x3b8] sm:$0xff] %v658_v55 }
  0x88   : > { %661 = vst [vmem:[%s1792_s26 + $0x3c0] sm:$0xff] %v660_v56 }
  0x89   : > { %663 = vst [vmem:[%s1792_s26 + $0x3c8] sm:$0xff] %v662_v57 }
  0x8a   : > { %665 = vst [vmem:[%s1792_s26 + $0x3d0] sm:$0xff] %v664_v58 }
  0x8b   : > { %667 = vst [vmem:[%s1792_s26 + $0x3d8] sm:$0xff] %v666_v59 }
  0x8c   : > { %669 = vst [vmem:[%s1792_s26 + $0x3e0] sm:$0xff] %v668_v60 }
  0x8d   : > { %671 = vst [vmem:[%s1792_s26 + $0x3e8] sm:$0xff] %v670_v61 }
  0x8e   : > { %673 = vst [vmem:[%s1792_s26 + $0x3f0] sm:$0xff] %v672_v62 }
  0x8f   : > { %675 = vst [vmem:[%s1792_s26 + $0x3f8] sm:$0xff] %v674_v63 }
  0x90 PF: > { %p1581_p5 = scmp.ge.s32.totalorder %s1731_s14, 1  ;;  %p680_p6 = scmp.lt.s32.totalorder %s1731_s14, 3 }
  0x92   : > { %p681_p7 = pnand %p1581_p5, %p680_p6 }
  0x93   : > { %s687_s30 = sand.u32 (!%p681_p7), 1, %s1723_s12   ;;  %s1583_s18 = sshll.u32 (!%p681_p7), %s1574_s15, 5 }
  0x94   : > { %684 = sbr.rel (%p681_p7) target bundleno = 574 (0x23e), region = 66  ;;  %s1582_s6 = sshll.u32 (!%p681_p7), %s687_s30, 10 }
  0x95   : > { %s2098_s17 = scalar_lea.vmem (!%p681_p7), [#allocation2], %s1582_s6  ;;  %p712_p8 = scmp.lt.s32.totalorder (!%p681_p7), %s1583_s18, 63 }
  0x99   : > { %v732_v0 = vld [vmem:[%s2315_s1 + $0x78] sm:$0xff]  ;;  %v731_v1 = vld [vmem:[%s2315_s1 + $0x70] sm:$0xff]  ;;  %v730_v2 = vld [vmem:[%s2315_s1 + $0x68] sm:$0xff]  ;;  %s2322_s18 = smov (!%p712_p8, %s1583_s18), 63 }
  0x9a   : > { %1089 = vmatpush.msra.mxu2 %v732_v0  ;;  %1267 = vmatpush.msra.mxu3 %v732_v0  ;;  %v729_v3 = vld [vmem:[%s2315_s1 + $0x60] sm:$0xff]  ;;  %v728_v4 = vld [vmem:[%s2315_s1 + $0x58] sm:$0xff]  ;;  %v727_v5 = vld [vmem:[%s2315_s1 + $0x50] sm:$0xff]  ;;  %s1584_s20 = sshll.u32 %s2322_s18, 3 }
  0x9b   : > { %765 = vmatpush.msra.mxu0 %v732_v0  ;;  %911 = vmatpush.msra.mxu1 %v732_v0  ;;  %v726_v6 = vld [vmem:[%s2315_s1 + $0x48] sm:$0xff]  ;;  %v725_v7 = vld [vmem:[%s2315_s1 + $0x40] sm:$0xff]  ;;  %v724_v8 = vld [vmem:[%s2315_s1 + $0x38] sm:$0xff]  ;;  %s2183_s23 = scalar_lea.vmem %s2317_s3, %s1584_s20 }
  0x9c   : > { %1090 = vmatpush.msra.mxu2 %v731_v1  ;;  %1268 = vmatpush.msra.mxu3 %v731_v1  ;;  %v723_v9 = vld [vmem:[%s2315_s1 + $0x30] sm:$0xff]  ;;  %v722_v10 = vld [vmem:[%s2315_s1 + $0x28] sm:$0xff]  ;;  %v721_v11 = vld [vmem:[%s2315_s1 + $0x20] sm:$0xff] }
  0x9d   : > { %766 = vmatpush.msra.mxu0 %v731_v1  ;;  %912 = vmatpush.msra.mxu1 %v731_v1  ;;  %v720_v12 = vld [vmem:[%s2315_s1 + $0x18] sm:$0xff]  ;;  %v719_v13 = vld [vmem:[%s2315_s1 + $0x10] sm:$0xff]  ;;  %v718_v14 = vld [vmem:[%s2315_s1 + $0x8] sm:$0xff] }
  0x9e   : > { %1091 = vmatpush.msra.mxu2 %v730_v2  ;;  %1269 = vmatpush.msra.mxu3 %v730_v2  ;;  %v717_v15 = vld [vmem:[%s2315_s1] sm:$0xff]  ;;  %v1618_v20 = vld [vmem:[%s2098_s17 + $0x208] sm:$0xff]  ;;  %v1619_v24 = vld [vmem:[%s2098_s17 + $0x210] sm:$0xff] }
  0x9f   : > { %767 = vmatpush.msra.mxu0 %v730_v2  ;;  %913 = vmatpush.msra.mxu1 %v730_v2  ;;  %v1617_v16 = vld [vmem:[%s2098_s17 + $0x200] sm:$0xff]  ;;  %v1650_v21 = vld [vmem:[%s2098_s17 + $0x308] sm:$0xff]  ;;  %v1651_v25 = vld [vmem:[%s2098_s17 + $0x310] sm:$0xff] }
  0xa0   : > { %1092 = vmatpush.msra.mxu2 %v729_v3  ;;  %1270 = vmatpush.msra.mxu3 %v729_v3  ;;  %v1649_v17 = vld [vmem:[%s2098_s17 + $0x300] sm:$0xff]  ;;  %v734_v22 = vld [vmem:[%s2098_s17 + $0x8] sm:$0xff]  ;;  %v735_v26 = vld [vmem:[%s2098_s17 + $0x10] sm:$0xff] }
  0xa1   : > { %768 = vmatpush.msra.mxu0 %v729_v3  ;;  %914 = vmatpush.msra.mxu1 %v729_v3  ;;  %v733_v18 = vld [vmem:[%s2098_s17] sm:$0xff]  ;;  %v1586_v23 = vld [vmem:[%s2098_s17 + $0x108] sm:$0xff]  ;;  %v1587_v27 = vld [vmem:[%s2098_s17 + $0x110] sm:$0xff] }
  0xa2   : > { %1093 = vmatpush.msra.mxu2 %v728_v4  ;;  %1271 = vmatpush.msra.mxu3 %v728_v4  ;;  %v1585_v19 = vld [vmem:[%s2098_s17 + $0x100] sm:$0xff]  ;;  %v1620_v28 = vld [vmem:[%s2098_s17 + $0x218] sm:$0xff]  ;;  %v1622_v36 = vld [vmem:[%s2098_s17 + $0x228] sm:$0xff] }
  0xa3   : > { %769 = vmatpush.msra.mxu0 %v728_v4  ;;  %915 = vmatpush.msra.mxu1 %v728_v4  ;;  %v1652_v29 = vld [vmem:[%s2098_s17 + $0x318] sm:$0xff]  ;;  %v1621_v32 = vld [vmem:[%s2098_s17 + $0x220] sm:$0xff]  ;;  %v1654_v37 = vld [vmem:[%s2098_s17 + $0x328] sm:$0xff] }
  0xa4   : > { %1094 = vmatpush.msra.mxu2 %v727_v5  ;;  %1272 = vmatpush.msra.mxu3 %v727_v5  ;;  %v736_v30 = vld [vmem:[%s2098_s17 + $0x18] sm:$0xff]  ;;  %v1653_v33 = vld [vmem:[%s2098_s17 + $0x320] sm:$0xff]  ;;  %v738_v38 = vld [vmem:[%s2098_s17 + $0x28] sm:$0xff] }
  0xa5   : > { %770 = vmatpush.msra.mxu0 %v727_v5  ;;  %916 = vmatpush.msra.mxu1 %v727_v5  ;;  %v1588_v31 = vld [vmem:[%s2098_s17 + $0x118] sm:$0xff]  ;;  %v737_v34 = vld [vmem:[%s2098_s17 + $0x20] sm:$0xff]  ;;  %v1590_v39 = vld [vmem:[%s2098_s17 + $0x128] sm:$0xff] }
  0xa6   : > { %1095 = vmatpush.msra.mxu2 %v726_v6  ;;  %1273 = vmatpush.msra.mxu3 %v726_v6  ;;  %v1589_v35 = vld [vmem:[%s2098_s17 + $0x120] sm:$0xff]  ;;  %v1623_v40 = vld [vmem:[%s2098_s17 + $0x230] sm:$0xff]  ;;  %v1624_v44 = vld [vmem:[%s2098_s17 + $0x238] sm:$0xff] }
  0xa7   : > { %771 = vmatpush.msra.mxu0 %v726_v6  ;;  %917 = vmatpush.msra.mxu1 %v726_v6  ;;  %v1655_v41 = vld [vmem:[%s2098_s17 + $0x330] sm:$0xff]  ;;  %v1656_v45 = vld [vmem:[%s2098_s17 + $0x338] sm:$0xff]  ;;  %v1625_v48 = vld [vmem:[%s2098_s17 + $0x240] sm:$0xff] }
  0xa8   : > { %1096 = vmatpush.msra.mxu2 %v725_v7  ;;  %1274 = vmatpush.msra.mxu3 %v725_v7  ;;  %v739_v42 = vld [vmem:[%s2098_s17 + $0x30] sm:$0xff]  ;;  %v740_v46 = vld [vmem:[%s2098_s17 + $0x38] sm:$0xff]  ;;  %v1657_v49 = vld [vmem:[%s2098_s17 + $0x340] sm:$0xff] }
  0xa9   : > { %772 = vmatpush.msra.mxu0 %v725_v7  ;;  %918 = vmatpush.msra.mxu1 %v725_v7  ;;  %v1591_v43 = vld [vmem:[%s2098_s17 + $0x130] sm:$0xff]  ;;  %v1592_v47 = vld [vmem:[%s2098_s17 + $0x138] sm:$0xff]  ;;  %v741_v50 = vld [vmem:[%s2098_s17 + $0x40] sm:$0xff] }
  0xaa   : > { %1097 = vmatpush.msra.mxu2 %v724_v8  ;;  %1275 = vmatpush.msra.mxu3 %v724_v8  ;;  %v1593_v51 = vld [vmem:[%s2098_s17 + $0x140] sm:$0xff]  ;;  %v1626_v52 = vld [vmem:[%s2098_s17 + $0x248] sm:$0xff]  ;;  %v1627_v56 = vld [vmem:[%s2098_s17 + $0x250] sm:$0xff] }
  0xab   : > { %773 = vmatpush.msra.mxu0 %v724_v8  ;;  %919 = vmatpush.msra.mxu1 %v724_v8  ;;  %v1658_v53 = vld [vmem:[%s2098_s17 + $0x348] sm:$0xff]  ;;  %v1659_v57 = vld [vmem:[%s2098_s17 + $0x350] sm:$0xff]  ;;  %v1628_v60 = vld [vmem:[%s2098_s17 + $0x258] sm:$0xff] }
  0xac   : > { %1098 = vmatpush.msra.mxu2 %v723_v9  ;;  %1276 = vmatpush.msra.mxu3 %v723_v9  ;;  %v742_v54 = vld [vmem:[%s2098_s17 + $0x48] sm:$0xff]  ;;  %v743_v58 = vld [vmem:[%s2098_s17 + $0x50] sm:$0xff]  ;;  %v1660_v61 = vld [vmem:[%s2098_s17 + $0x358] sm:$0xff] }
  0xad   : > { %774 = vmatpush.msra.mxu0 %v723_v9  ;;  %920 = vmatpush.msra.mxu1 %v723_v9  ;;  %v1594_v55 = vld [vmem:[%s2098_s17 + $0x148] sm:$0xff]  ;;  %v1595_v59 = vld [vmem:[%s2098_s17 + $0x150] sm:$0xff]  ;;  %v744_v62 = vld [vmem:[%s2098_s17 + $0x58] sm:$0xff] }
  0xae   : > { %1099 = vmatpush.msra.mxu2 %v722_v10  ;;  %1277 = vmatpush.msra.mxu3 %v722_v10  ;;  %v1596_v63 = vld [vmem:[%s2098_s17 + $0x158] sm:$0xff]  ;;  %v1629_v0 = vld [vmem:[%s2098_s17 + $0x260] sm:$0xff]  ;;  %v1630_v4 = vld [vmem:[%s2098_s17 + $0x268] sm:$0xff] }
  0xaf   : > { %775 = vmatpush.msra.mxu0 %v722_v10  ;;  %921 = vmatpush.msra.mxu1 %v722_v10  ;;  %v1661_v1 = vld [vmem:[%s2098_s17 + $0x360] sm:$0xff]  ;;  %v1662_v5 = vld [vmem:[%s2098_s17 + $0x368] sm:$0xff]  ;;  %v1631_v8 = vld [vmem:[%s2098_s17 + $0x270] sm:$0xff] }
  0xb0   : > { %1100 = vmatpush.msra.mxu2 %v721_v11  ;;  %1278 = vmatpush.msra.mxu3 %v721_v11  ;;  %v745_v2 = vld [vmem:[%s2098_s17 + $0x60] sm:$0xff]  ;;  %v746_v6 = vld [vmem:[%s2098_s17 + $0x68] sm:$0xff]  ;;  %v1663_v9 = vld [vmem:[%s2098_s17 + $0x370] sm:$0xff] }
  0xb1   : > { %776 = vmatpush.msra.mxu0 %v721_v11  ;;  %922 = vmatpush.msra.mxu1 %v721_v11  ;;  %v1597_v3 = vld [vmem:[%s2098_s17 + $0x160] sm:$0xff]  ;;  %v1598_v7 = vld [vmem:[%s2098_s17 + $0x168] sm:$0xff]  ;;  %v747_v10 = vld [vmem:[%s2098_s17 + $0x70] sm:$0xff] }
  0xb2   : > { %1101 = vmatpush.msra.mxu2 %v720_v12  ;;  %1279 = vmatpush.msra.mxu3 %v720_v12  ;;  %v1599_v11 = vld [vmem:[%s2098_s17 + $0x170] sm:$0xff] }
  0xb3   : > { %777 = vmatpush.msra.mxu0 %v720_v12  ;;  %923 = vmatpush.msra.mxu1 %v720_v12  ;;  %v1632_v12 = vld [vmem:[%s2098_s17 + $0x278] sm:$0xff] }
  0xb4   : > { %1102 = vmatpush.msra.mxu2 %v719_v13  ;;  %1280 = vmatpush.msra.mxu3 %v719_v13 }
  0xb5   : > { %778 = vmatpush.msra.mxu0 %v719_v13  ;;  %924 = vmatpush.msra.mxu1 %v719_v13  ;;  %v1664_v13 = vld [vmem:[%s2098_s17 + $0x378] sm:$0xff] }
  0xb6   : > { %1103 = vmatpush.msra.mxu2 %v718_v14  ;;  %1281 = vmatpush.msra.mxu3 %v718_v14 }
  0xb7   : > { %779 = vmatpush.msra.mxu0 %v718_v14  ;;  %925 = vmatpush.msra.mxu1 %v718_v14  ;;  %v748_v14 = vld [vmem:[%s2098_s17 + $0x78] sm:$0xff] }
  0xb8   : > { %1104 = vmatpush.msra.mxu2 %v717_v15  ;;  %1282 = vmatpush.msra.mxu3 %v717_v15 }
  0xb9   : > { %1105 = vmatmul.f32.vlgmr.msra.gmra.mxu2 %v1617_v16  ;;  %1283 = vmatmul.f32.vlgmr.msra.gmra.mxu3 %v1649_v17  ;;  %v1633_v16 = vld [vmem:[%s2098_s17 + $0x280] sm:$0xff] }
  0xba   : > { %780 = vmatpush.msra.mxu0 %v717_v15  ;;  %926 = vmatpush.msra.mxu1 %v717_v15  ;;  %v1600_v15 = vld [vmem:[%s2098_s17 + $0x178] sm:$0xff]  ;;  %v1665_v17 = vld [vmem:[%s2098_s17 + $0x380] sm:$0xff] }
  0xbb   : > { %781 = vmatmul.f32.vlgmr.msra.gmra.mxu0 %v733_v18  ;;  %927 = vmatmul.f32.vlgmr.msra.gmra.mxu1 %v1585_v19 }
  0xc1   : > { %1108 = vmatmul.f32.gmra.mxu2 %v1618_v20  ;;  %1286 = vmatmul.f32.gmra.mxu3 %v1650_v21  ;;  %v749_v20 = vld [vmem:[%s2098_s17 + $0x80] sm:$0xff] }
  0xc2   : > { %v1601_v21 = vld [vmem:[%s2098_s17 + $0x180] sm:$0xff] }
  0xc3   : > { %784 = vmatmul.f32.gmra.mxu0 %v734_v22  ;;  %930 = vmatmul.f32.gmra.mxu1 %v1586_v23 }
  0xc9   : > { %1111 = vmatmul.f32.gmra.mxu2 %v1619_v24  ;;  %1289 = vmatmul.f32.gmra.mxu3 %v1651_v25 }
  0xcb   : > { %787 = vmatmul.f32.gmra.mxu0 %v735_v26  ;;  %933 = vmatmul.f32.gmra.mxu1 %v1587_v27  ;;  %v2173_v26 = vld [vmem:[%s2316_s2] ss:$0 sm:$0xff]  ;;  %v1634_v27 = vld [vmem:[%s2098_s17 + $0x288] sm:$0xff] }
  0xd1   : > { %1114 = vmatmul.f32.gmra.mxu2 %v1620_v28  ;;  %1292 = vmatmul.f32.gmra.mxu3 %v1652_v29  ;;  %v1666_v28 = vld [vmem:[%s2098_s17 + $0x388] sm:$0xff] }
  0xd3   : > { %790 = vmatmul.f32.gmra.mxu0 %v736_v30  ;;  %936 = vmatmul.f32.gmra.mxu1 %v1588_v31 }
  0xd9   : > { %1117 = vmatmul.f32.gmra.mxu2 %v1621_v32  ;;  %1295 = vmatmul.f32.gmra.mxu3 %v1653_v33  ;;  %v750_v32 = vld [vmem:[%s2098_s17 + $0x88] sm:$0xff] }
  0xda   : > { %v1602_v33 = vld [vmem:[%s2098_s17 + $0x188] sm:$0xff] }
  0xdb   : > { %793 = vmatmul.f32.gmra.mxu0 %v737_v34  ;;  %939 = vmatmul.f32.gmra.mxu1 %v1589_v35 }
  0xe1   : > { %1120 = vmatmul.f32.gmra.mxu2 %v1622_v36  ;;  %1298 = vmatmul.f32.gmra.mxu3 %v1654_v37 }
  0xe3   : > { %796 = vmatmul.f32.gmra.mxu0 %v738_v38  ;;  %942 = vmatmul.f32.gmra.mxu1 %v1590_v39 }
  0xe9   : > { %1123 = vmatmul.f32.gmra.mxu2 %v1623_v40  ;;  %1301 = vmatmul.f32.gmra.mxu3 %v1655_v41  ;;  %v1635_v40 = vld [vmem:[%s2098_s17 + $0x290] sm:$0xff] }
  0xea   : > { %v1667_v41 = vld [vmem:[%s2098_s17 + $0x390] sm:$0xff] }
  0xeb   : > { %799 = vmatmul.f32.gmra.mxu0 %v739_v42  ;;  %945 = vmatmul.f32.gmra.mxu1 %v1591_v43 }
  0xf1   : > { %1126 = vmatmul.f32.gmra.mxu2 %v1624_v44  ;;  %1304 = vmatmul.f32.gmra.mxu3 %v1656_v45  ;;  %v751_v45 = vld [vmem:[%s2098_s17 + $0x90] sm:$0xff] }
  0xf3   : > { %802 = vmatmul.f32.gmra.mxu0 %v740_v46  ;;  %948 = vmatmul.f32.gmra.mxu1 %v1592_v47  ;;  %v1603_v46 = vld [vmem:[%s2098_s17 + $0x190] sm:$0xff] }
  0xf9   : > { %1129 = vmatmul.f32.gmra.mxu2 %v1625_v48  ;;  %1307 = vmatmul.f32.gmra.mxu3 %v1657_v49 }
  0xfb   : > { %805 = vmatmul.f32.gmra.mxu0 %v741_v50  ;;  %951 = vmatmul.f32.gmra.mxu1 %v1593_v51 }
 0x101   : > { %1132 = vmatmul.f32.gmra.mxu2 %v1626_v52  ;;  %1310 = vmatmul.f32.gmra.mxu3 %v1658_v53  ;;  %v1636_v53 = vld [vmem:[%s2098_s17 + $0x298] sm:$0xff] }
 0x103   : > { %808 = vmatmul.f32.gmra.mxu0 %v742_v54  ;;  %954 = vmatmul.f32.gmra.mxu1 %v1594_v55  ;;  %v1668_v54 = vld [vmem:[%s2098_s17 + $0x398] sm:$0xff] }
 0x109   : > { %1135 = vmatmul.f32.gmra.mxu2 %v1627_v56  ;;  %1313 = vmatmul.f32.gmra.mxu3 %v1659_v57 }
 0x10b   : > { %811 = vmatmul.f32.gmra.mxu0 %v743_v58  ;;  %957 = vmatmul.f32.gmra.mxu1 %v1595_v59  ;;  %v752_v58 = vld [vmem:[%s2098_s17 + $0x98] sm:$0xff] }
 0x10c   : > { %v1604_v59 = vld [vmem:[%s2098_s17 + $0x198] sm:$0xff] }
 0x111   : > { %1138 = vmatmul.f32.gmra.mxu2 %v1628_v60  ;;  %1316 = vmatmul.f32.gmra.mxu3 %v1660_v61 }
 0x113   : > { %814 = vmatmul.f32.gmra.mxu0 %v744_v62  ;;  %960 = vmatmul.f32.gmra.mxu1 %v1596_v63 }
 0x119   : > { %1141 = vmatmul.f32.gmra.mxu2 %v1629_v0  ;;  %1319 = vmatmul.f32.gmra.mxu3 %v1661_v1 }
 0x11b   : > { %817 = vmatmul.f32.gmra.mxu0 %v745_v2  ;;  %963 = vmatmul.f32.gmra.mxu1 %v1597_v3  ;;  %v1637_v2 = vld [vmem:[%s2098_s17 + $0x2a0] sm:$0xff] }
 0x11c   : > { %v1669_v3 = vld [vmem:[%s2098_s17 + $0x3a0] sm:$0xff] }
 0x121   : > { %1144 = vmatmul.f32.gmra.mxu2 %v1630_v4  ;;  %1322 = vmatmul.f32.gmra.mxu3 %v1662_v5 }
 0x123   : > { %820 = vmatmul.f32.gmra.mxu0 %v746_v6  ;;  %966 = vmatmul.f32.gmra.mxu1 %v1598_v7  ;;  %v753_v7 = vld [vmem:[%s2098_s17 + $0xa0] sm:$0xff] }
 0x129   : > { %1147 = vmatmul.f32.gmra.mxu2 %v1631_v8  ;;  %1325 = vmatmul.f32.gmra.mxu3 %v1663_v9  ;;  %v1605_v8 = vld [vmem:[%s2098_s17 + $0x1a0] sm:$0xff] }
 0x12b   : > { %823 = vmatmul.f32.gmra.mxu0 %v747_v10  ;;  %969 = vmatmul.f32.gmra.mxu1 %v1599_v11 }
 0x131   : > { %1150 = vmatmul.f32.gmra.mxu2 %v1632_v12  ;;  %1328 = vmatmul.f32.gmra.mxu3 %v1664_v13 }
 0x133   : > { %826 = vmatmul.f32.gmra.mxu0 %v748_v14  ;;  %972 = vmatmul.f32.gmra.mxu1 %v1600_v15  ;;  %v1638_v15 = vld [vmem:[%s2098_s17 + $0x2a8] sm:$0xff] }
 0x138   : > { %v782_v18 = vpop.f32.mrf.mxu0  ;;  %v928_v19 = vpop.f32.mrf.mxu1 }
 0x139   : > { %1153 = vmatmul.f32.gmra.mxu2 %v1633_v16  ;;  %v1024_v22 = vmax.f32 %v782_v18, %v928_v19  ;;  %1331 = vmatmul.f32.gmra.mxu3 %v1665_v17  ;;  %v1670_v16 = vld [vmem:[%s2098_s17 + $0x3a8] sm:$0xff] }
 0x13b   : > { %829 = vmatmul.f32.gmra.mxu0 %v749_v20  ;;  %975 = vmatmul.f32.gmra.mxu1 %v1601_v21  ;;  %v754_v20 = vld [vmem:[%s2098_s17 + $0xa8] sm:$0xff] }
 0x13c   : > { %v1106_v23 = vpop.f32.mrf.mxu2  ;;  %v1284_v24 = vpop.f32.mrf.mxu3  ;;  %v1606_v21 = vld [vmem:[%s2098_s17 + $0x1a8] sm:$0xff] }
 0x13d   : > { %v1202_v25 = vmax.f32 %v1024_v22, %v1106_v23 }
 0x13f   : > { %v1380_v29 = vmax.f32 %v1202_v25, %v1284_v24 }
 0x140   : > { %v785_v30 = vpop.f32.mrf.mxu0  ;;  %v931_v31 = vpop.f32.mrf.mxu1 }
 0x141   : > { %v1416_v34 = vadd.f32 %v2173_v26, %v1380_v29  ;;  %1156 = vmatmul.f32.gmra.mxu2 %v1634_v27  ;;  %v1025_v35 = vmax.f32 %v785_v30, %v931_v31  ;;  %1334 = vmatmul.f32.gmra.mxu3 %v1666_v28  ;;  %v1639_v29 = vld [vmem:[%s2098_s17 + $0x2b0] sm:$0xff] }
 0x142   : > { %v1671_v30 = vld [vmem:[%s2098_s17 + $0x3b0] sm:$0xff] }
 0x143   : > { %v1448_v36 = vmax.f32 %v1416_v34, 0.0  ;;  %832 = vmatmul.f32.gmra.mxu0 %v750_v32  ;;  %978 = vmatmul.f32.gmra.mxu1 %v1602_v33  ;;  %v755_v34 = vld [vmem:[%s2098_s17 + $0xb0] sm:$0xff] }
 0x144   : > { %v1109_v37 = vpop.f32.mrf.mxu2  ;;  %v1287_v38 = vpop.f32.mrf.mxu3 }
 0x145   : > { %1480 = vst [vmem:[%s2183_s23] sm:$0xff] %v1448_v36  ;;  %v1203_v39 = vmax.f32 %v1025_v35, %v1109_v37  ;;  %v1607_v35 = vld [vmem:[%s2098_s17 + $0x1b0] sm:$0xff] }
 0x147   : > { %v1381_v42 = vmax.f32 %v1203_v39, %v1287_v38 }
 0x148   : > { %v788_v43 = vpop.f32.mrf.mxu0  ;;  %v934_v44 = vpop.f32.mrf.mxu1 }
 0x149   : > { %v1417_v47 = vadd.f32 %v2173_v26, %v1381_v42  ;;  %1159 = vmatmul.f32.gmra.mxu2 %v1635_v40  ;;  %v1026_v48 = vmax.f32 %v788_v43, %v934_v44  ;;  %1337 = vmatmul.f32.gmra.mxu3 %v1667_v41  ;;  %v1640_v42 = vld [vmem:[%s2098_s17 + $0x2b8] sm:$0xff] }
 0x14a   : > { %v1672_v43 = vld [vmem:[%s2098_s17 + $0x3b8] sm:$0xff] }
 0x14b   : > { %v1449_v49 = vmax.f32 %v1417_v47, 0.0  ;;  %835 = vmatmul.f32.gmra.mxu0 %v751_v45  ;;  %981 = vmatmul.f32.gmra.mxu1 %v1603_v46  ;;  %v756_v47 = vld [vmem:[%s2098_s17 + $0xb8] sm:$0xff] }
 0x14c   : > { %v1112_v50 = vpop.f32.mrf.mxu2  ;;  %v1290_v51 = vpop.f32.mrf.mxu3 }
 0x14d   : > { %1481 = vst [vmem:[%s2183_s23 + $0x8] sm:$0xff] %v1449_v49  ;;  %v1204_v52 = vmax.f32 %v1026_v48, %v1112_v50  ;;  %v1608_v48 = vld [vmem:[%s2098_s17 + $0x1b8] sm:$0xff] }
 0x14f   : > { %v1382_v55 = vmax.f32 %v1204_v52, %v1290_v51 }
 0x150   : > { %v791_v56 = vpop.f32.mrf.mxu0  ;;  %v937_v57 = vpop.f32.mrf.mxu1 }
 0x151   : > { %v1418_v60 = vadd.f32 %v2173_v26, %v1382_v55  ;;  %1162 = vmatmul.f32.gmra.mxu2 %v1636_v53  ;;  %v1027_v61 = vmax.f32 %v791_v56, %v937_v57  ;;  %1340 = vmatmul.f32.gmra.mxu3 %v1668_v54  ;;  %v1641_v55 = vld [vmem:[%s2098_s17 + $0x2c0] sm:$0xff] }
 0x152   : > { %v1673_v56 = vld [vmem:[%s2098_s17 + $0x3c0] sm:$0xff] }
 0x153   : > { %v1450_v62 = vmax.f32 %v1418_v60, 0.0  ;;  %838 = vmatmul.f32.gmra.mxu0 %v752_v58  ;;  %984 = vmatmul.f32.gmra.mxu1 %v1604_v59  ;;  %v757_v60 = vld [vmem:[%s2098_s17 + $0xc0] sm:$0xff] }
 0x154   : > { %v1115_v63 = vpop.f32.mrf.mxu2  ;;  %v1293_v0 = vpop.f32.mrf.mxu3 }
 0x155   : > { %1482 = vst [vmem:[%s2183_s23 + $0x10] sm:$0xff] %v1450_v62  ;;  %v1205_v1 = vmax.f32 %v1027_v61, %v1115_v63  ;;  %v1609_v61 = vld [vmem:[%s2098_s17 + $0x1c0] sm:$0xff] }
 0x157   : > { %v1383_v4 = vmax.f32 %v1205_v1, %v1293_v0 }
 0x158   : > { %v794_v5 = vpop.f32.mrf.mxu0  ;;  %v940_v6 = vpop.f32.mrf.mxu1 }
 0x159   : > { %v1419_v9 = vadd.f32 %v2173_v26, %v1383_v4  ;;  %1165 = vmatmul.f32.gmra.mxu2 %v1637_v2  ;;  %v1028_v10 = vmax.f32 %v794_v5, %v940_v6  ;;  %1343 = vmatmul.f32.gmra.mxu3 %v1669_v3  ;;  %v1642_v4 = vld [vmem:[%s2098_s17 + $0x2c8] sm:$0xff] }
 0x15a   : > { %v1674_v5 = vld [vmem:[%s2098_s17 + $0x3c8] sm:$0xff] }
 0x15b   : > { %v1451_v11 = vmax.f32 %v1419_v9, 0.0  ;;  %841 = vmatmul.f32.gmra.mxu0 %v753_v7  ;;  %987 = vmatmul.f32.gmra.mxu1 %v1605_v8  ;;  %v758_v9 = vld [vmem:[%s2098_s17 + $0xc8] sm:$0xff] }
 0x15c   : > { %v1118_v12 = vpop.f32.mrf.mxu2  ;;  %v1296_v13 = vpop.f32.mrf.mxu3 }
 0x15d   : > { %1483 = vst [vmem:[%s2183_s23 + $0x18] sm:$0xff] %v1451_v11  ;;  %v1206_v14 = vmax.f32 %v1028_v10, %v1118_v12  ;;  %v1610_v10 = vld [vmem:[%s2098_s17 + $0x1c8] sm:$0xff] }
 0x15f   : > { %v1384_v17 = vmax.f32 %v1206_v14, %v1296_v13 }
 0x160   : > { %v797_v18 = vpop.f32.mrf.mxu0  ;;  %v943_v19 = vpop.f32.mrf.mxu1 }
 0x161   : > { %v1420_v22 = vadd.f32 %v2173_v26, %v1384_v17  ;;  %1168 = vmatmul.f32.gmra.mxu2 %v1638_v15  ;;  %v1029_v23 = vmax.f32 %v797_v18, %v943_v19  ;;  %1346 = vmatmul.f32.gmra.mxu3 %v1670_v16  ;;  %v1643_v17 = vld [vmem:[%s2098_s17 + $0x2d0] sm:$0xff] }
 0x162   : > { %v1675_v18 = vld [vmem:[%s2098_s17 + $0x3d0] sm:$0xff] }
 0x163   : > { %v1452_v24 = vmax.f32 %v1420_v22, 0.0  ;;  %844 = vmatmul.f32.gmra.mxu0 %v754_v20  ;;  %990 = vmatmul.f32.gmra.mxu1 %v1606_v21  ;;  %v759_v22 = vld [vmem:[%s2098_s17 + $0xd0] sm:$0xff] }
 0x164   : > { %v1121_v25 = vpop.f32.mrf.mxu2  ;;  %v1299_v27 = vpop.f32.mrf.mxu3 }
 0x165   : > { %1484 = vst [vmem:[%s2183_s23 + $0x20] sm:$0xff] %v1452_v24  ;;  %v1207_v28 = vmax.f32 %v1029_v23, %v1121_v25  ;;  %v1611_v23 = vld [vmem:[%s2098_s17 + $0x1d0] sm:$0xff] }
 0x167   : > { %v1385_v31 = vmax.f32 %v1207_v28, %v1299_v27 }
 0x168   : > { %v800_v32 = vpop.f32.mrf.mxu0  ;;  %v946_v33 = vpop.f32.mrf.mxu1 }
 0x169   : > { %v1421_v36 = vadd.f32 %v2173_v26, %v1385_v31  ;;  %1171 = vmatmul.f32.gmra.mxu2 %v1639_v29  ;;  %v1030_v37 = vmax.f32 %v800_v32, %v946_v33  ;;  %1349 = vmatmul.f32.gmra.mxu3 %v1671_v30  ;;  %v1644_v31 = vld [vmem:[%s2098_s17 + $0x2d8] sm:$0xff] }
 0x16a   : > { %v1676_v32 = vld [vmem:[%s2098_s17 + $0x3d8] sm:$0xff] }
 0x16b   : > { %v1453_v38 = vmax.f32 %v1421_v36, 0.0  ;;  %847 = vmatmul.f32.gmra.mxu0 %v755_v34  ;;  %993 = vmatmul.f32.gmra.mxu1 %v1607_v35  ;;  %v760_v36 = vld [vmem:[%s2098_s17 + $0xd8] sm:$0xff] }
 0x16c   : > { %v1124_v39 = vpop.f32.mrf.mxu2  ;;  %v1302_v40 = vpop.f32.mrf.mxu3 }
 0x16d   : > { %1485 = vst [vmem:[%s2183_s23 + $0x28] sm:$0xff] %v1453_v38  ;;  %v1208_v41 = vmax.f32 %v1030_v37, %v1124_v39  ;;  %v1612_v37 = vld [vmem:[%s2098_s17 + $0x1d8] sm:$0xff] }
 0x16f   : > { %v1386_v44 = vmax.f32 %v1208_v41, %v1302_v40 }
 0x170   : > { %v803_v45 = vpop.f32.mrf.mxu0  ;;  %v949_v46 = vpop.f32.mrf.mxu1 }
 0x171   : > { %v1422_v49 = vadd.f32 %v2173_v26, %v1386_v44  ;;  %1174 = vmatmul.f32.gmra.mxu2 %v1640_v42  ;;  %v1031_v50 = vmax.f32 %v803_v45, %v949_v46  ;;  %1352 = vmatmul.f32.gmra.mxu3 %v1672_v43  ;;  %v1645_v44 = vld [vmem:[%s2098_s17 + $0x2e0] sm:$0xff] }
 0x172   : > { %v1677_v45 = vld [vmem:[%s2098_s17 + $0x3e0] sm:$0xff] }
 0x173   : > { %v1454_v51 = vmax.f32 %v1422_v49, 0.0  ;;  %850 = vmatmul.f32.gmra.mxu0 %v756_v47  ;;  %996 = vmatmul.f32.gmra.mxu1 %v1608_v48  ;;  %v761_v49 = vld [vmem:[%s2098_s17 + $0xe0] sm:$0xff] }
 0x174   : > { %v1127_v52 = vpop.f32.mrf.mxu2  ;;  %v1305_v53 = vpop.f32.mrf.mxu3 }
 0x175   : > { %1486 = vst [vmem:[%s2183_s23 + $0x30] sm:$0xff] %v1454_v51  ;;  %v1209_v54 = vmax.f32 %v1031_v50, %v1127_v52  ;;  %v1613_v50 = vld [vmem:[%s2098_s17 + $0x1e0] sm:$0xff] }
 0x177   : > { %v1387_v57 = vmax.f32 %v1209_v54, %v1305_v53 }
 0x178   : > { %v806_v58 = vpop.f32.mrf.mxu0  ;;  %v952_v59 = vpop.f32.mrf.mxu1 }
 0x179   : > { %v1423_v62 = vadd.f32 %v2173_v26, %v1387_v57  ;;  %1177 = vmatmul.f32.gmra.mxu2 %v1641_v55  ;;  %v1032_v63 = vmax.f32 %v806_v58, %v952_v59  ;;  %1355 = vmatmul.f32.gmra.mxu3 %v1673_v56  ;;  %v1646_v57 = vld [vmem:[%s2098_s17 + $0x2e8] sm:$0xff] }
 0x17a   : > { %v1678_v58 = vld [vmem:[%s2098_s17 + $0x3e8] sm:$0xff] }
 0x17b   : > { %v1455_v0 = vmax.f32 %v1423_v62, 0.0  ;;  %853 = vmatmul.f32.gmra.mxu0 %v757_v60  ;;  %999 = vmatmul.f32.gmra.mxu1 %v1609_v61  ;;  %v762_v62 = vld [vmem:[%s2098_s17 + $0xe8] sm:$0xff] }
 0x17c   : > { %v1130_v1 = vpop.f32.mrf.mxu2  ;;  %v1308_v2 = vpop.f32.mrf.mxu3 }
 0x17d   : > { %1487 = vst [vmem:[%s2183_s23 + $0x38] sm:$0xff] %v1455_v0  ;;  %v1210_v3 = vmax.f32 %v1032_v63, %v1130_v1  ;;  %v1614_v63 = vld [vmem:[%s2098_s17 + $0x1e8] sm:$0xff] }
 0x17f   : > { %v1388_v6 = vmax.f32 %v1210_v3, %v1308_v2 }
 0x180   : > { %v809_v7 = vpop.f32.mrf.mxu0  ;;  %v955_v8 = vpop.f32.mrf.mxu1 }
 0x181   : > { %v1424_v11 = vadd.f32 %v2173_v26, %v1388_v6  ;;  %1180 = vmatmul.f32.gmra.mxu2 %v1642_v4  ;;  %v1033_v12 = vmax.f32 %v809_v7, %v955_v8  ;;  %1358 = vmatmul.f32.gmra.mxu3 %v1674_v5  ;;  %v1647_v6 = vld [vmem:[%s2098_s17 + $0x2f0] sm:$0xff] }
 0x182   : > { %v1679_v7 = vld [vmem:[%s2098_s17 + $0x3f0] sm:$0xff] }
 0x183   : > { %v1456_v13 = vmax.f32 %v1424_v11, 0.0  ;;  %856 = vmatmul.f32.gmra.mxu0 %v758_v9  ;;  %1002 = vmatmul.f32.gmra.mxu1 %v1610_v10  ;;  %v763_v11 = vld [vmem:[%s2098_s17 + $0xf0] sm:$0xff] }
 0x184   : > { %v1133_v14 = vpop.f32.mrf.mxu2  ;;  %v1311_v15 = vpop.f32.mrf.mxu3 }
 0x185   : > { %1488 = vst [vmem:[%s2183_s23 + $0x40] sm:$0xff] %v1456_v13  ;;  %v1211_v16 = vmax.f32 %v1033_v12, %v1133_v14  ;;  %v1615_v12 = vld [vmem:[%s2098_s17 + $0x1f0] sm:$0xff] }
 0x187   : > { %v1389_v19 = vmax.f32 %v1211_v16, %v1311_v15 }
 0x188   : > { %v812_v20 = vpop.f32.mrf.mxu0  ;;  %v958_v21 = vpop.f32.mrf.mxu1 }
 0x189   : > { %v1425_v24 = vadd.f32 %v2173_v26, %v1389_v19  ;;  %1183 = vmatmul.f32.gmra.mxu2 %v1643_v17  ;;  %v1034_v25 = vmax.f32 %v812_v20, %v958_v21  ;;  %1361 = vmatmul.f32.gmra.mxu3 %v1675_v18  ;;  %v1648_v19 = vld [vmem:[%s2098_s17 + $0x2f8] sm:$0xff] }
 0x18a   : > { %v1680_v20 = vld [vmem:[%s2098_s17 + $0x3f8] sm:$0xff] }
 0x18b   : > { %v1457_v27 = vmax.f32 %v1425_v24, 0.0  ;;  %859 = vmatmul.f32.gmra.mxu0 %v759_v22  ;;  %1005 = vmatmul.f32.gmra.mxu1 %v1611_v23  ;;  %v764_v24 = vld [vmem:[%s2098_s17 + $0xf8] sm:$0xff] }
 0x18c   : > { %v1136_v28 = vpop.f32.mrf.mxu2  ;;  %v1314_v29 = vpop.f32.mrf.mxu3 }
 0x18d   : > { %1489 = vst [vmem:[%s2183_s23 + $0x48] sm:$0xff] %v1457_v27  ;;  %v1212_v30 = vmax.f32 %v1034_v25, %v1136_v28  ;;  %v1616_v25 = vld [vmem:[%s2098_s17 + $0x1f8] sm:$0xff] }
 0x18f   : > { %v1390_v33 = vmax.f32 %v1212_v30, %v1314_v29 }
 0x190   : > { %v815_v34 = vpop.f32.mrf.mxu0  ;;  %v961_v35 = vpop.f32.mrf.mxu1 }
 0x191   : > { %v1426_v38 = vadd.f32 %v2173_v26, %v1390_v33  ;;  %1186 = vmatmul.f32.gmra.mxu2 %v1644_v31  ;;  %v1035_v39 = vmax.f32 %v815_v34, %v961_v35  ;;  %1364 = vmatmul.f32.gmra.mxu3 %v1676_v32 }
 0x193   : > { %v1458_v40 = vmax.f32 %v1426_v38, 0.0  ;;  %862 = vmatmul.f32.gmra.mxu0 %v760_v36  ;;  %1008 = vmatmul.f32.gmra.mxu1 %v1612_v37 }
 0x194   : > { %v1139_v41 = vpop.f32.mrf.mxu2  ;;  %v1317_v42 = vpop.f32.mrf.mxu3 }
 0x195   : > { %1490 = vst [vmem:[%s2183_s23 + $0x50] sm:$0xff] %v1458_v40  ;;  %v1213_v43 = vmax.f32 %v1035_v39, %v1139_v41 }
 0x197   : > { %v1391_v46 = vmax.f32 %v1213_v43, %v1317_v42 }
 0x198   : > { %v818_v47 = vpop.f32.mrf.mxu0  ;;  %v964_v48 = vpop.f32.mrf.mxu1 }
 0x199   : > { %v1427_v51 = vadd.f32 %v2173_v26, %v1391_v46  ;;  %1189 = vmatmul.f32.gmra.mxu2 %v1645_v44  ;;  %v1036_v52 = vmax.f32 %v818_v47, %v964_v48  ;;  %1367 = vmatmul.f32.gmra.mxu3 %v1677_v45 }
 0x19b   : > { %v1459_v53 = vmax.f32 %v1427_v51, 0.0  ;;  %865 = vmatmul.f32.gmra.mxu0 %v761_v49  ;;  %1011 = vmatmul.f32.gmra.mxu1 %v1613_v50 }
 0x19c   : > { %v1142_v54 = vpop.f32.mrf.mxu2  ;;  %v1320_v55 = vpop.f32.mrf.mxu3 }
 0x19d   : > { %1491 = vst [vmem:[%s2183_s23 + $0x58] sm:$0xff] %v1459_v53  ;;  %v1214_v56 = vmax.f32 %v1036_v52, %v1142_v54 }
 0x19f   : > { %v1392_v59 = vmax.f32 %v1214_v56, %v1320_v55 }
 0x1a0   : > { %v821_v60 = vpop.f32.mrf.mxu0  ;;  %v967_v61 = vpop.f32.mrf.mxu1 }
 0x1a1   : > { %v1428_v0 = vadd.f32 %v2173_v26, %v1392_v59  ;;  %1192 = vmatmul.f32.gmra.mxu2 %v1646_v57  ;;  %v1037_v1 = vmax.f32 %v821_v60, %v967_v61  ;;  %1370 = vmatmul.f32.gmra.mxu3 %v1678_v58 }
 0x1a3   : > { %v1460_v2 = vmax.f32 %v1428_v0, 0.0  ;;  %868 = vmatmul.f32.gmra.mxu0 %v762_v62  ;;  %1014 = vmatmul.f32.gmra.mxu1 %v1614_v63 }
 0x1a4   : > { %v1145_v3 = vpop.f32.mrf.mxu2  ;;  %v1323_v4 = vpop.f32.mrf.mxu3 }
 0x1a5   : > { %1492 = vst [vmem:[%s2183_s23 + $0x60] sm:$0xff] %v1460_v2  ;;  %v1215_v5 = vmax.f32 %v1037_v1, %v1145_v3 }
 0x1a7   : > { %v1393_v8 = vmax.f32 %v1215_v5, %v1323_v4 }
 0x1a8   : > { %v824_v9 = vpop.f32.mrf.mxu0  ;;  %v970_v10 = vpop.f32.mrf.mxu1 }
 0x1a9   : > { %v1429_v13 = vadd.f32 %v2173_v26, %v1393_v8  ;;  %1195 = vmatmul.f32.gmra.mxu2 %v1647_v6  ;;  %v1038_v14 = vmax.f32 %v824_v9, %v970_v10  ;;  %1373 = vmatmul.f32.gmra.mxu3 %v1679_v7 }
 0x1ab   : > { %v1461_v15 = vmax.f32 %v1429_v13, 0.0  ;;  %871 = vmatmul.f32.gmra.mxu0 %v763_v11  ;;  %1017 = vmatmul.f32.gmra.mxu1 %v1615_v12 }
 0x1ac   : > { %v1148_v16 = vpop.f32.mrf.mxu2  ;;  %v1326_v17 = vpop.f32.mrf.mxu3 }
 0x1ad   : > { %1493 = vst [vmem:[%s2183_s23 + $0x68] sm:$0xff] %v1461_v15  ;;  %v1216_v18 = vmax.f32 %v1038_v14, %v1148_v16 }
 0x1af   : > { %v1394_v21 = vmax.f32 %v1216_v18, %v1326_v17 }
 0x1b0   : > { %v827_v22 = vpop.f32.mrf.mxu0  ;;  %v973_v23 = vpop.f32.mrf.mxu1 }
 0x1b1   : > { %v1430_v27 = vadd.f32 %v2173_v26, %v1394_v21  ;;  %1198 = vmatmul.f32.gmra.mxu2 %v1648_v19  ;;  %v1039_v28 = vmax.f32 %v827_v22, %v973_v23  ;;  %1376 = vmatmul.f32.gmra.mxu3 %v1680_v20 }
 0x1b3   : > { %v1462_v29 = vmax.f32 %v1430_v27, 0.0  ;;  %874 = vmatmul.f32.gmra.mxu0 %v764_v24  ;;  %1020 = vmatmul.f32.gmra.mxu1 %v1616_v25 }
 0x1b4   : > { %v1151_v30 = vpop.f32.mrf.mxu2  ;;  %v1329_v31 = vpop.f32.mrf.mxu3 }
 0x1b5   : > { %1494 = vst [vmem:[%s2183_s23 + $0x70] sm:$0xff] %v1462_v29  ;;  %v1217_v32 = vmax.f32 %v1039_v28, %v1151_v30 }
 0x1b7   : > { %v1395_v33 = vmax.f32 %v1217_v32, %v1329_v31 }
 0x1b8   : > { %v830_v34 = vpop.f32.mrf.mxu0  ;;  %v976_v35 = vpop.f32.mrf.mxu1 }
 0x1b9   : > { %v1431_v36 = vadd.f32 %v2173_v26, %v1395_v33  ;;  %v1040_v37 = vmax.f32 %v830_v34, %v976_v35 }
 0x1bb   : > { %v1463_v38 = vmax.f32 %v1431_v36, 0.0 }
 0x1bc   : > { %v1154_v39 = vpop.f32.mrf.mxu2  ;;  %v1332_v40 = vpop.f32.mrf.mxu3 }
 0x1bd   : > { %1495 = vst [vmem:[%s2183_s23 + $0x78] sm:$0xff] %v1463_v38  ;;  %v1218_v41 = vmax.f32 %v1040_v37, %v1154_v39 }
 0x1bf   : > { %v1396_v42 = vmax.f32 %v1218_v41, %v1332_v40 }
 0x1c0   : > { %v833_v43 = vpop.f32.mrf.mxu0  ;;  %v979_v44 = vpop.f32.mrf.mxu1 }
 0x1c1   : > { %v1432_v45 = vadd.f32 %v2173_v26, %v1396_v42  ;;  %v1041_v46 = vmax.f32 %v833_v43, %v979_v44 }
 0x1c3   : > { %v1464_v47 = vmax.f32 %v1432_v45, 0.0 }
 0x1c4   : > { %v1157_v48 = vpop.f32.mrf.mxu2  ;;  %v1335_v49 = vpop.f32.mrf.mxu3 }
 0x1c5   : > { %1496 = vst [vmem:[%s2183_s23 + $0x80] sm:$0xff] %v1464_v47  ;;  %v1219_v50 = vmax.f32 %v1041_v46, %v1157_v48 }
 0x1c7   : > { %v1397_v51 = vmax.f32 %v1219_v50, %v1335_v49 }
 0x1c8   : > { %v836_v52 = vpop.f32.mrf.mxu0  ;;  %v982_v53 = vpop.f32.mrf.mxu1 }
 0x1c9   : > { %v1433_v54 = vadd.f32 %v2173_v26, %v1397_v51  ;;  %v1042_v55 = vmax.f32 %v836_v52, %v982_v53 }
 0x1cb   : > { %v1465_v56 = vmax.f32 %v1433_v54, 0.0 }
 0x1cc   : > { %v1160_v57 = vpop.f32.mrf.mxu2  ;;  %v1338_v58 = vpop.f32.mrf.mxu3 }
 0x1cd   : > { %1497 = vst [vmem:[%s2183_s23 + $0x88] sm:$0xff] %v1465_v56  ;;  %v1220_v59 = vmax.f32 %v1042_v55, %v1160_v57 }
 0x1cf   : > { %v1398_v60 = vmax.f32 %v1220_v59, %v1338_v58 }
 0x1d0   : > { %v839_v61 = vpop.f32.mrf.mxu0  ;;  %v985_v62 = vpop.f32.mrf.mxu1 }
 0x1d1   : > { %v1434_v63 = vadd.f32 %v2173_v26, %v1398_v60  ;;  %v1043_v0 = vmax.f32 %v839_v61, %v985_v62 }
 0x1d3   : > { %v1466_v1 = vmax.f32 %v1434_v63, 0.0 }
 0x1d4   : > { %v1163_v2 = vpop.f32.mrf.mxu2  ;;  %v1341_v3 = vpop.f32.mrf.mxu3 }
 0x1d5   : > { %1498 = vst [vmem:[%s2183_s23 + $0x90] sm:$0xff] %v1466_v1  ;;  %v1221_v4 = vmax.f32 %v1043_v0, %v1163_v2 }
 0x1d7   : > { %v1399_v5 = vmax.f32 %v1221_v4, %v1341_v3 }
 0x1d8   : > { %v842_v6 = vpop.f32.mrf.mxu0  ;;  %v988_v7 = vpop.f32.mrf.mxu1 }
 0x1d9   : > { %v1435_v8 = vadd.f32 %v2173_v26, %v1399_v5  ;;  %v1044_v9 = vmax.f32 %v842_v6, %v988_v7 }
 0x1db   : > { %v1467_v10 = vmax.f32 %v1435_v8, 0.0 }
 0x1dc   : > { %v1166_v11 = vpop.f32.mrf.mxu2  ;;  %v1344_v12 = vpop.f32.mrf.mxu3 }
 0x1dd   : > { %1499 = vst [vmem:[%s2183_s23 + $0x98] sm:$0xff] %v1467_v10  ;;  %v1222_v13 = vmax.f32 %v1044_v9, %v1166_v11 }
 0x1df   : > { %v1400_v14 = vmax.f32 %v1222_v13, %v1344_v12 }
 0x1e0   : > { %v845_v15 = vpop.f32.mrf.mxu0  ;;  %v991_v16 = vpop.f32.mrf.mxu1 }
 0x1e1   : > { %v1436_v17 = vadd.f32 %v2173_v26, %v1400_v14  ;;  %v1045_v18 = vmax.f32 %v845_v15, %v991_v16 }
 0x1e3   : > { %v1468_v19 = vmax.f32 %v1436_v17, 0.0 }
 0x1e4   : > { %v1169_v20 = vpop.f32.mrf.mxu2  ;;  %v1347_v21 = vpop.f32.mrf.mxu3 }
 0x1e5   : > { %1500 = vst [vmem:[%s2183_s23 + $0xa0] sm:$0xff] %v1468_v19  ;;  %v1223_v22 = vmax.f32 %v1045_v18, %v1169_v20 }
 0x1e7   : > { %v1401_v23 = vmax.f32 %v1223_v22, %v1347_v21 }
 0x1e8   : > { %v848_v24 = vpop.f32.mrf.mxu0  ;;  %v994_v25 = vpop.f32.mrf.mxu1 }
 0x1e9   : > { %v1437_v27 = vadd.f32 %v2173_v26, %v1401_v23  ;;  %v1046_v28 = vmax.f32 %v848_v24, %v994_v25 }
 0x1eb   : > { %v1469_v29 = vmax.f32 %v1437_v27, 0.0 }
 0x1ec   : > { %v1172_v30 = vpop.f32.mrf.mxu2  ;;  %v1350_v31 = vpop.f32.mrf.mxu3 }
 0x1ed   : > { %1501 = vst [vmem:[%s2183_s23 + $0xa8] sm:$0xff] %v1469_v29  ;;  %v1224_v32 = vmax.f32 %v1046_v28, %v1172_v30 }
 0x1ef   : > { %v1402_v33 = vmax.f32 %v1224_v32, %v1350_v31 }
 0x1f0   : > { %v851_v34 = vpop.f32.mrf.mxu0  ;;  %v997_v35 = vpop.f32.mrf.mxu1 }
 0x1f1   : > { %v1438_v36 = vadd.f32 %v2173_v26, %v1402_v33  ;;  %v1047_v37 = vmax.f32 %v851_v34, %v997_v35 }
 0x1f3   : > { %v1470_v38 = vmax.f32 %v1438_v36, 0.0 }
 0x1f4   : > { %v1175_v39 = vpop.f32.mrf.mxu2  ;;  %v1353_v40 = vpop.f32.mrf.mxu3 }
 0x1f5   : > { %1502 = vst [vmem:[%s2183_s23 + $0xb0] sm:$0xff] %v1470_v38  ;;  %v1225_v41 = vmax.f32 %v1047_v37, %v1175_v39 }
 0x1f7   : > { %v1403_v42 = vmax.f32 %v1225_v41, %v1353_v40 }
 0x1f8   : > { %v854_v43 = vpop.f32.mrf.mxu0  ;;  %v1000_v44 = vpop.f32.mrf.mxu1 }
 0x1f9   : > { %v1439_v45 = vadd.f32 %v2173_v26, %v1403_v42  ;;  %v1048_v46 = vmax.f32 %v854_v43, %v1000_v44 }
 0x1fb   : > { %v1471_v47 = vmax.f32 %v1439_v45, 0.0 }
 0x1fc   : > { %v1178_v48 = vpop.f32.mrf.mxu2  ;;  %v1356_v49 = vpop.f32.mrf.mxu3 }
 0x1fd   : > { %1503 = vst [vmem:[%s2183_s23 + $0xb8] sm:$0xff] %v1471_v47  ;;  %v1226_v50 = vmax.f32 %v1048_v46, %v1178_v48 }
 0x1ff   : > { %v1404_v51 = vmax.f32 %v1226_v50, %v1356_v49 }
 0x200   : > { %v857_v52 = vpop.f32.mrf.mxu0  ;;  %v1003_v53 = vpop.f32.mrf.mxu1 }
 0x201   : > { %v1440_v54 = vadd.f32 %v2173_v26, %v1404_v51  ;;  %v1049_v55 = vmax.f32 %v857_v52, %v1003_v53 }
 0x203   : > { %v1472_v56 = vmax.f32 %v1440_v54, 0.0 }
 0x204   : > { %v1181_v57 = vpop.f32.mrf.mxu2  ;;  %v1359_v58 = vpop.f32.mrf.mxu3 }
 0x205   : > { %1504 = vst [vmem:[%s2183_s23 + $0xc0] sm:$0xff] %v1472_v56  ;;  %v1227_v59 = vmax.f32 %v1049_v55, %v1181_v57 }
 0x207   : > { %v1405_v60 = vmax.f32 %v1227_v59, %v1359_v58 }
 0x208   : > { %v860_v61 = vpop.f32.mrf.mxu0  ;;  %v1006_v62 = vpop.f32.mrf.mxu1 }
 0x209   : > { %v1441_v63 = vadd.f32 %v2173_v26, %v1405_v60  ;;  %v1050_v0 = vmax.f32 %v860_v61, %v1006_v62 }
 0x20b   : > { %v1473_v1 = vmax.f32 %v1441_v63, 0.0 }
 0x20c   : > { %v1184_v2 = vpop.f32.mrf.mxu2  ;;  %v1362_v3 = vpop.f32.mrf.mxu3 }
 0x20d   : > { %1505 = vst [vmem:[%s2183_s23 + $0xc8] sm:$0xff] %v1473_v1  ;;  %v1228_v4 = vmax.f32 %v1050_v0, %v1184_v2 }
 0x20f   : > { %v1406_v5 = vmax.f32 %v1228_v4, %v1362_v3 }
 0x210   : > { %v863_v6 = vpop.f32.mrf.mxu0  ;;  %v1009_v7 = vpop.f32.mrf.mxu1 }
 0x211   : > { %v1442_v8 = vadd.f32 %v2173_v26, %v1406_v5  ;;  %v1051_v9 = vmax.f32 %v863_v6, %v1009_v7 }
 0x213   : > { %v1474_v10 = vmax.f32 %v1442_v8, 0.0 }
 0x214   : > { %v1187_v11 = vpop.f32.mrf.mxu2  ;;  %v1365_v12 = vpop.f32.mrf.mxu3 }
 0x215   : > { %1506 = vst [vmem:[%s2183_s23 + $0xd0] sm:$0xff] %v1474_v10  ;;  %v1229_v13 = vmax.f32 %v1051_v9, %v1187_v11 }
 0x217   : > { %v1407_v14 = vmax.f32 %v1229_v13, %v1365_v12 }
 0x218   : > { %v866_v15 = vpop.f32.mrf.mxu0  ;;  %v1012_v16 = vpop.f32.mrf.mxu1 }
 0x219   : > { %v1443_v17 = vadd.f32 %v2173_v26, %v1407_v14  ;;  %v1052_v18 = vmax.f32 %v866_v15, %v1012_v16 }
 0x21b   : > { %v1475_v19 = vmax.f32 %v1443_v17, 0.0 }
 0x21c   : > { %v1190_v20 = vpop.f32.mrf.mxu2  ;;  %v1368_v21 = vpop.f32.mrf.mxu3 }
 0x21d   : > { %1507 = vst [vmem:[%s2183_s23 + $0xd8] sm:$0xff] %v1475_v19  ;;  %v1230_v22 = vmax.f32 %v1052_v18, %v1190_v20 }
 0x21f   : > { %v1408_v23 = vmax.f32 %v1230_v22, %v1368_v21 }
 0x220   : > { %v869_v24 = vpop.f32.mrf.mxu0  ;;  %v1015_v25 = vpop.f32.mrf.mxu1 }
 0x221   : > { %v1444_v27 = vadd.f32 %v2173_v26, %v1408_v23  ;;  %v1053_v28 = vmax.f32 %v869_v24, %v1015_v25 }
 0x223   : > { %v1476_v29 = vmax.f32 %v1444_v27, 0.0 }
 0x224   : > { %v1193_v30 = vpop.f32.mrf.mxu2  ;;  %v1371_v31 = vpop.f32.mrf.mxu3 }
 0x225   : > { %1508 = vst [vmem:[%s2183_s23 + $0xe0] sm:$0xff] %v1476_v29  ;;  %v1231_v32 = vmax.f32 %v1053_v28, %v1193_v30 }
 0x227   : > { %v1409_v33 = vmax.f32 %v1231_v32, %v1371_v31 }
 0x228   : > { %v872_v34 = vpop.f32.mrf.mxu0  ;;  %v1018_v35 = vpop.f32.mrf.mxu1 }
 0x229   : > { %v1445_v36 = vadd.f32 %v2173_v26, %v1409_v33  ;;  %v1054_v37 = vmax.f32 %v872_v34, %v1018_v35 }
 0x22b   : > { %v1477_v38 = vmax.f32 %v1445_v36, 0.0 }
 0x22c   : > { %v1196_v39 = vpop.f32.mrf.mxu2  ;;  %v1374_v40 = vpop.f32.mrf.mxu3 }
 0x22d   : > { %1509 = vst [vmem:[%s2183_s23 + $0xe8] sm:$0xff] %v1477_v38  ;;  %v1232_v41 = vmax.f32 %v1054_v37, %v1196_v39 }
 0x22f   : > { %v1410_v42 = vmax.f32 %v1232_v41, %v1374_v40 }
 0x230   : > { %v875_v43 = vpop.f32.mrf.mxu0  ;;  %v1021_v44 = vpop.f32.mrf.mxu1 }
 0x231   : > { %v1446_v45 = vadd.f32 %v2173_v26, %v1410_v42  ;;  %v1055_v46 = vmax.f32 %v875_v43, %v1021_v44 }
 0x233   : > { %v1478_v47 = vmax.f32 %v1446_v45, 0.0 }
 0x234   : > { %v1199_v48 = vpop.f32.mrf.mxu2  ;;  %v1377_v49 = vpop.f32.mrf.mxu3 }
 0x235   : > { %1510 = vst [vmem:[%s2183_s23 + $0xf0] sm:$0xff] %v1478_v47  ;;  %v1233_v50 = vmax.f32 %v1055_v46, %v1199_v48 }
 0x237   : > { %v1411_v51 = vmax.f32 %v1233_v50, %v1377_v49 }
 0x239   : > { %v1447_v52 = vadd.f32 %v2173_v26, %v1411_v51 }
 0x23b   : > { %v1479_v53 = vmax.f32 %v1447_v52, 0.0 }
 0x23d   : > { %1511 = vst [vmem:[%s2183_s23 + $0xf8] sm:$0xff] %v1479_v53 }
 0x23e PF: > { %p10_p9 = scmp.ge.s32.totalorder %s1770_s16, 4   ;;  %s2318_s12 = smov %s1727_s13 }
 0x23f   : > { %s2319_s13 = smov %s1779_s19  ;;  %s2320_s14 = smov %s1770_s16 }
 0x240   :  { %12 = sbr.rel (!%p10_p9) target bundleno = 2 (0x2), region = 108 }

// kernel: convnet_forward.4
= control target key start
LH: loop header
LB: loop body
LE: loop exit
PB: predicated region body
PF: predicated region fallthrough
CT: control target
= control target key end

     0   :  { %s1047_s1 = inlined_call_operand.vmem [shape: f32[256,128], index: 1, kind: input, shape index: {}]   ;;  %s1048_s0 = inlined_call_operand.vmem [shape: f32[4,56,256], index: 0, kind: input, shape index: {}]   ;;  %s1049_s2 = inlined_call_operand.vmem [shape: f32[1,128], index: 2, kind: input, shape index: {}]   ;;  %s1050_s3 = inlined_call_operand.vmem [shape: f32[56,128], index: 3, kind: output, shape index: {}]  }
   0x1   :  { %v525_v0 = vld [vmem:[%s1047_s1 + $0x78] sm:$0xff]  ;;  %v535_v2 = vld [vmem:[%s1047_s1 + $0x70] sm:$0xff]  ;;  %v549_v4 = vld [vmem:[%s1047_s1 + $0x68] sm:$0xff] }
   0x2   :  { %v530_v1 = vld [vmem:[%s1047_s1 + $0xf8] sm:$0xff]  ;;  %60 = vmatpush.msra.mxu0 %v525_v0  ;;  %v542_v3 = vld [vmem:[%s1047_s1 + $0xf0] sm:$0xff]  ;;  %151 = vmatpush.msra.mxu2 %v525_v0  ;;  %v554_v5 = vld [vmem:[%s1047_s1 + $0xe8] sm:$0xff] }
   0x3   :  { %98 = vmatpush.msra.mxu1 %v530_v1  ;;  %189 = vmatpush.msra.mxu3 %v530_v1  ;;  %v563_v6 = vld [vmem:[%s1047_s1 + $0x60] sm:$0xff]  ;;  %v577_v8 = vld [vmem:[%s1047_s1 + $0x58] sm:$0xff]  ;;  %v591_v10 = vld [vmem:[%s1047_s1 + $0x50] sm:$0xff] }
   0x4   :  { %61 = vmatpush.msra.mxu0 %v535_v2  ;;  %152 = vmatpush.msra.mxu2 %v535_v2  ;;  %v568_v7 = vld [vmem:[%s1047_s1 + $0xe0] sm:$0xff]  ;;  %v582_v9 = vld [vmem:[%s1047_s1 + $0xd8] sm:$0xff]  ;;  %v596_v11 = vld [vmem:[%s1047_s1 + $0xd0] sm:$0xff] }
   0x5   :  { %99 = vmatpush.msra.mxu1 %v542_v3  ;;  %190 = vmatpush.msra.mxu3 %v542_v3  ;;  %v605_v12 = vld [vmem:[%s1047_s1 + $0x48] sm:$0xff]  ;;  %v619_v14 = vld [vmem:[%s1047_s1 + $0x40] sm:$0xff]  ;;  %v633_v16 = vld [vmem:[%s1047_s1 + $0x38] sm:$0xff] }
   0x6   :  { %62 = vmatpush.msra.mxu0 %v549_v4  ;;  %153 = vmatpush.msra.mxu2 %v549_v4  ;;  %v610_v13 = vld [vmem:[%s1047_s1 + $0xc8] sm:$0xff]  ;;  %v624_v15 = vld [vmem:[%s1047_s1 + $0xc0] sm:$0xff]  ;;  %v638_v17 = vld [vmem:[%s1047_s1 + $0xb8] sm:$0xff] }
   0x7   :  { %100 = vmatpush.msra.mxu1 %v554_v5  ;;  %191 = vmatpush.msra.mxu3 %v554_v5  ;;  %v647_v18 = vld [vmem:[%s1047_s1 + $0x30] sm:$0xff]  ;;  %v661_v20 = vld [vmem:[%s1047_s1 + $0x28] sm:$0xff]  ;;  %v675_v22 = vld [vmem:[%s1047_s1 + $0x20] sm:$0xff] }
   0x8   :  { %63 = vmatpush.msra.mxu0 %v563_v6  ;;  %154 = vmatpush.msra.mxu2 %v563_v6  ;;  %v652_v19 = vld [vmem:[%s1047_s1 + $0xb0] sm:$0xff]  ;;  %v666_v21 = vld [vmem:[%s1047_s1 + $0xa8] sm:$0xff]  ;;  %v680_v23 = vld [vmem:[%s1047_s1 + $0xa0] sm:$0xff] }
   0x9   :  { %101 = vmatpush.msra.mxu1 %v568_v7  ;;  %192 = vmatpush.msra.mxu3 %v568_v7  ;;  %v689_v24 = vld [vmem:[%s1047_s1 + $0x18] sm:$0xff]  ;;  %v703_v26 = vld [vmem:[%s1047_s1 + $0x10] sm:$0xff]  ;;  %v717_v28 = vld [vmem:[%s1047_s1 + $0x8] sm:$0xff] }
   0xa   :  { %64 = vmatpush.msra.mxu0 %v577_v8  ;;  %155 = vmatpush.msra.mxu2 %v577_v8  ;;  %v694_v25 = vld [vmem:[%s1047_s1 + $0x98] sm:$0xff]  ;;  %v708_v27 = vld [vmem:[%s1047_s1 + $0x90] sm:$0xff]  ;;  %v722_v29 = vld [vmem:[%s1047_s1 + $0x88] sm:$0xff] }
   0xb   :  { %102 = vmatpush.msra.mxu1 %v582_v9  ;;  %193 = vmatpush.msra.mxu3 %v582_v9  ;;  %v731_v30 = vld [vmem:[%s1047_s1] sm:$0xff]  ;;  %v47_v33 = vld [vmem:[%s1048_s0 + $0x8] sm:$0xff]  ;;  %v459_v34 = vld [vmem:[%s1048_s0 + $0x70] sm:$0xff] }
   0xc   :  { %65 = vmatpush.msra.mxu0 %v591_v10  ;;  %156 = vmatpush.msra.mxu2 %v591_v10  ;;  %v736_v31 = vld [vmem:[%s1047_s1 + $0x80] sm:$0xff]  ;;  %v460_v35 = vld [vmem:[%s1048_s0 + $0x78] sm:$0xff]  ;;  %v48_v36 = vld [vmem:[%s1048_s0 + $0x10] sm:$0xff] }
   0xd   :  { %103 = vmatpush.msra.mxu1 %v596_v11  ;;  %194 = vmatpush.msra.mxu3 %v596_v11  ;;  %v46_v32 = vld [vmem:[%s1048_s0] sm:$0xff]  ;;  %v49_v37 = vld [vmem:[%s1048_s0 + $0x18] sm:$0xff]  ;;  %v462_v39 = vld [vmem:[%s1048_s0 + $0x88] sm:$0xff] }
   0xe   :  { %66 = vmatpush.msra.mxu0 %v605_v12  ;;  %157 = vmatpush.msra.mxu2 %v605_v12  ;;  %v461_v38 = vld [vmem:[%s1048_s0 + $0x80] sm:$0xff]  ;;  %v51_v41 = vld [vmem:[%s1048_s0 + $0x28] sm:$0xff]  ;;  %v463_v42 = vld [vmem:[%s1048_s0 + $0x90] sm:$0xff] }
   0xf   :  { %104 = vmatpush.msra.mxu1 %v610_v13  ;;  %195 = vmatpush.msra.mxu3 %v610_v13  ;;  %v50_v40 = vld [vmem:[%s1048_s0 + $0x20] sm:$0xff]  ;;  %v464_v43 = vld [vmem:[%s1048_s0 + $0x98] sm:$0xff]  ;;  %v52_v44 = vld [vmem:[%s1048_s0 + $0x30] sm:$0xff] }
  0x10   :  { %67 = vmatpush.msra.mxu0 %v619_v14  ;;  %158 = vmatpush.msra.mxu2 %v619_v14  ;;  %v53_v45 = vld [vmem:[%s1048_s0 + $0x38] sm:$0xff]  ;;  %v465_v46 = vld [vmem:[%s1048_s0 + $0xa0] sm:$0xff]  ;;  %v466_v47 = vld [vmem:[%s1048_s0 + $0xa8] sm:$0xff] }
  0x11   :  { %105 = vmatpush.msra.mxu1 %v624_v15  ;;  %196 = vmatpush.msra.mxu3 %v624_v15  ;;  %v54_v48 = vld [vmem:[%s1048_s0 + $0x40] sm:$0xff]  ;;  %v55_v49 = vld [vmem:[%s1048_s0 + $0x48] sm:$0xff]  ;;  %v467_v50 = vld [vmem:[%s1048_s0 + $0xb0] sm:$0xff] }
  0x12   :  { %68 = vmatpush.msra.mxu0 %v633_v16  ;;  %159 = vmatpush.msra.mxu2 %v633_v16  ;;  %v468_v51 = vld [vmem:[%s1048_s0 + $0xb8] sm:$0xff]  ;;  %v56_v52 = vld [vmem:[%s1048_s0 + $0x50] sm:$0xff]  ;;  %v469_v54 = vld [vmem:[%s1048_s0 + $0xc0] sm:$0xff] }
  0x13   :  { %106 = vmatpush.msra.mxu1 %v638_v17  ;;  %197 = vmatpush.msra.mxu3 %v638_v17  ;;  %v57_v53 = vld [vmem:[%s1048_s0 + $0x58] sm:$0xff]  ;;  %v470_v55 = vld [vmem:[%s1048_s0 + $0xc8] sm:$0xff]  ;;  %v58_v56 = vld [vmem:[%s1048_s0 + $0x60] sm:$0xff] }
  0x14   :  { %69 = vmatpush.msra.mxu0 %v647_v18  ;;  %160 = vmatpush.msra.mxu2 %v647_v18  ;;  %v59_v57 = vld [vmem:[%s1048_s0 + $0x68] sm:$0xff]  ;;  %v471_v58 = vld [vmem:[%s1048_s0 + $0xd0] sm:$0xff]  ;;  %v472_v59 = vld [vmem:[%s1048_s0 + $0xd8] sm:$0xff] }
  0x15   :  { %107 = vmatpush.msra.mxu1 %v652_v19  ;;  %198 = vmatpush.msra.mxu3 %v652_v19  ;;  %v473_v60 = vld [vmem:[%s1048_s0 + $0xe0] sm:$0xff]  ;;  %v474_v61 = vld [vmem:[%s1048_s0 + $0xe8] sm:$0xff]  ;;  %v487_v62 = vld [vmem:[%s1048_s0 + $0x150] sm:$0xff] }
  0x16   :  { %70 = vmatpush.msra.mxu0 %v661_v20  ;;  %161 = vmatpush.msra.mxu2 %v661_v20  ;;  %v488_v63 = vld [vmem:[%s1048_s0 + $0x158] sm:$0xff] }
  0x17   :  { %108 = vmatpush.msra.mxu1 %v666_v21  ;;  %199 = vmatpush.msra.mxu3 %v666_v21 }
  0x18   :  { %71 = vmatpush.msra.mxu0 %v675_v22  ;;  %162 = vmatpush.msra.mxu2 %v675_v22 }
  0x19   :  { %109 = vmatpush.msra.mxu1 %v680_v23  ;;  %200 = vmatpush.msra.mxu3 %v680_v23 }
  0x1a   :  { %72 = vmatpush.msra.mxu0 %v689_v24  ;;  %163 = vmatpush.msra.mxu2 %v689_v24 }
  0x1b   :  { %110 = vmatpush.msra.mxu1 %v694_v25  ;;  %201 = vmatpush.msra.mxu3 %v694_v25 }
  0x1c   :  { %73 = vmatpush.msra.mxu0 %v703_v26  ;;  %164 = vmatpush.msra.mxu2 %v703_v26 }
  0x1d   :  { %111 = vmatpush.msra.mxu1 %v708_v27  ;;  %202 = vmatpush.msra.mxu3 %v708_v27 }
  0x1e   :  { %74 = vmatpush.msra.mxu0 %v717_v28  ;;  %165 = vmatpush.msra.mxu2 %v717_v28 }
  0x1f   :  { %112 = vmatpush.msra.mxu1 %v722_v29  ;;  %203 = vmatpush.msra.mxu3 %v722_v29 }
  0x20   :  { %75 = vmatpush.msra.mxu0 %v731_v30  ;;  %166 = vmatpush.msra.mxu2 %v731_v30 }
  0x21   :  { %113 = vmatpush.msra.mxu1 %v736_v31  ;;  %204 = vmatpush.msra.mxu3 %v736_v31 }
  0x22   :  { %76 = vmatmul.f32.vlgmr.msra.gmra.mxu0 %v46_v32  ;;  %114 = vmatmul.f32.vlgmr.msra.gmra.mxu1 %v47_v33 }
  0x23   :  { %167 = vmatmul.f32.vlgmr.msra.gmra.mxu2 %v459_v34  ;;  %205 = vmatmul.f32.vlgmr.msra.gmra.mxu3 %v460_v35 }
  0x24   :  { %347 = vmatpush.msrb.mxu2 %v525_v0  ;;  %385 = vmatpush.msrb.mxu3 %v530_v1 }
  0x25   :  { %249 = vmatpush.msrb.mxu0 %v525_v0  ;;  %287 = vmatpush.msrb.mxu1 %v530_v1  ;;  %v475_v0 = vld [vmem:[%s1048_s0 + $0xf0] sm:$0xff]  ;;  %v476_v1 = vld [vmem:[%s1048_s0 + $0xf8] sm:$0xff] }
  0x26   :  { %348 = vmatpush.msrb.mxu2 %v535_v2  ;;  %386 = vmatpush.msrb.mxu3 %v542_v3 }
  0x27   :  { %250 = vmatpush.msrb.mxu0 %v535_v2  ;;  %288 = vmatpush.msrb.mxu1 %v542_v3  ;;  %v489_v2 = vld [vmem:[%s1048_s0 + $0x160] sm:$0xff]  ;;  %v490_v3 = vld [vmem:[%s1048_s0 + $0x168] sm:$0xff] }
  0x28   :  { %349 = vmatpush.msrb.mxu2 %v549_v4  ;;  %387 = vmatpush.msrb.mxu3 %v554_v5 }
  0x29   :  { %251 = vmatpush.msrb.mxu0 %v549_v4  ;;  %289 = vmatpush.msrb.mxu1 %v554_v5  ;;  %v477_v4 = vld [vmem:[%s1048_s0 + $0x100] sm:$0xff]  ;;  %v478_v5 = vld [vmem:[%s1048_s0 + $0x108] sm:$0xff] }
  0x2a   :  { %79 = vmatmul.f32.gmra.mxu0 %v48_v36  ;;  %117 = vmatmul.f32.gmra.mxu1 %v49_v37 }
  0x2b   :  { %170 = vmatmul.f32.gmra.mxu2 %v461_v38  ;;  %208 = vmatmul.f32.gmra.mxu3 %v462_v39 }
  0x2c   :  { %350 = vmatpush.msrb.mxu2 %v563_v6  ;;  %388 = vmatpush.msrb.mxu3 %v568_v7 }
  0x2d   :  { %252 = vmatpush.msrb.mxu0 %v563_v6  ;;  %290 = vmatpush.msrb.mxu1 %v568_v7  ;;  %v491_v6 = vld [vmem:[%s1048_s0 + $0x170] sm:$0xff]  ;;  %v492_v7 = vld [vmem:[%s1048_s0 + $0x178] sm:$0xff] }
  0x2e   :  { %351 = vmatpush.msrb.mxu2 %v577_v8  ;;  %389 = vmatpush.msrb.mxu3 %v582_v9 }
  0x2f   :  { %253 = vmatpush.msrb.mxu0 %v577_v8  ;;  %291 = vmatpush.msrb.mxu1 %v582_v9  ;;  %v479_v8 = vld [vmem:[%s1048_s0 + $0x110] sm:$0xff]  ;;  %v480_v9 = vld [vmem:[%s1048_s0 + $0x118] sm:$0xff] }
  0x30   :  { %352 = vmatpush.msrb.mxu2 %v591_v10  ;;  %390 = vmatpush.msrb.mxu3 %v596_v11 }
  0x31   :  { %254 = vmatpush.msrb.mxu0 %v591_v10  ;;  %292 = vmatpush.msrb.mxu1 %v596_v11  ;;  %v493_v10 = vld [vmem:[%s1048_s0 + $0x180] sm:$0xff]  ;;  %v494_v11 = vld [vmem:[%s1048_s0 + $0x188] sm:$0xff] }
  0x32   :  { %82 = vmatmul.f32.gmra.mxu0 %v50_v40  ;;  %120 = vmatmul.f32.gmra.mxu1 %v51_v41 }
  0x33   :  { %173 = vmatmul.f32.gmra.mxu2 %v463_v42  ;;  %211 = vmatmul.f32.gmra.mxu3 %v464_v43 }
  0x34   :  { %353 = vmatpush.msrb.mxu2 %v605_v12  ;;  %391 = vmatpush.msrb.mxu3 %v610_v13 }
  0x35   :  { %255 = vmatpush.msrb.mxu0 %v605_v12  ;;  %293 = vmatpush.msrb.mxu1 %v610_v13  ;;  %v481_v12 = vld [vmem:[%s1048_s0 + $0x120] sm:$0xff]  ;;  %v482_v13 = vld [vmem:[%s1048_s0 + $0x128] sm:$0xff] }
  0x36   :  { %354 = vmatpush.msrb.mxu2 %v619_v14  ;;  %392 = vmatpush.msrb.mxu3 %v624_v15 }
  0x37   :  { %256 = vmatpush.msrb.mxu0 %v619_v14  ;;  %294 = vmatpush.msrb.mxu1 %v624_v15  ;;  %v495_v14 = vld [vmem:[%s1048_s0 + $0x190] sm:$0xff]  ;;  %v496_v15 = vld [vmem:[%s1048_s0 + $0x198] sm:$0xff] }
  0x38   :  { %355 = vmatpush.msrb.mxu2 %v633_v16  ;;  %393 = vmatpush.msrb.mxu3 %v638_v17 }
  0x39   :  { %257 = vmatpush.msrb.mxu0 %v633_v16  ;;  %295 = vmatpush.msrb.mxu1 %v638_v17  ;;  %v483_v16 = vld [vmem:[%s1048_s0 + $0x130] sm:$0xff]  ;;  %v484_v17 = vld [vmem:[%s1048_s0 + $0x138] sm:$0xff] }
  0x3a   :  { %85 = vmatmul.f32.gmra.mxu0 %v52_v44  ;;  %123 = vmatmul.f32.gmra.mxu1 %v53_v45 }
  0x3b   :  { %176 = vmatmul.f32.gmra.mxu2 %v465_v46  ;;  %214 = vmatmul.f32.gmra.mxu3 %v466_v47 }
  0x3c   :  { %356 = vmatpush.msrb.mxu2 %v647_v18  ;;  %394 = vmatpush.msrb.mxu3 %v652_v19 }
  0x3d   :  { %258 = vmatpush.msrb.mxu0 %v647_v18  ;;  %296 = vmatpush.msrb.mxu1 %v652_v19  ;;  %v497_v18 = vld [vmem:[%s1048_s0 + $0x1a0] sm:$0xff]  ;;  %v498_v19 = vld [vmem:[%s1048_s0 + $0x1a8] sm:$0xff] }
  0x3e   :  { %357 = vmatpush.msrb.mxu2 %v661_v20  ;;  %395 = vmatpush.msrb.mxu3 %v666_v21 }
  0x3f   :  { %259 = vmatpush.msrb.mxu0 %v661_v20  ;;  %297 = vmatpush.msrb.mxu1 %v666_v21  ;;  %v485_v20 = vld [vmem:[%s1048_s0 + $0x140] sm:$0xff]  ;;  %v486_v21 = vld [vmem:[%s1048_s0 + $0x148] sm:$0xff] }
  0x40   :  { %358 = vmatpush.msrb.mxu2 %v675_v22  ;;  %396 = vmatpush.msrb.mxu3 %v680_v23 }
  0x41   :  { %260 = vmatpush.msrb.mxu0 %v675_v22  ;;  %298 = vmatpush.msrb.mxu1 %v680_v23  ;;  %v499_v22 = vld [vmem:[%s1048_s0 + $0x1b0] sm:$0xff]  ;;  %v500_v23 = vld [vmem:[%s1048_s0 + $0x1b8] sm:$0xff] }
  0x42   :  { %88 = vmatmul.f32.gmra.mxu0 %v54_v48  ;;  %126 = vmatmul.f32.gmra.mxu1 %v55_v49 }
  0x43   :  { %179 = vmatmul.f32.gmra.mxu2 %v467_v50  ;;  %217 = vmatmul.f32.gmra.mxu3 %v468_v51 }
  0x44   :  { %359 = vmatpush.msrb.mxu2 %v689_v24  ;;  %397 = vmatpush.msrb.mxu3 %v694_v25 }
  0x45   :  { %261 = vmatpush.msrb.mxu0 %v689_v24  ;;  %299 = vmatpush.msrb.mxu1 %v694_v25 }
  0x46   :  { %360 = vmatpush.msrb.mxu2 %v703_v26  ;;  %398 = vmatpush.msrb.mxu3 %v708_v27 }
  0x47   :  { %262 = vmatpush.msrb.mxu0 %v703_v26  ;;  %300 = vmatpush.msrb.mxu1 %v708_v27 }
  0x48   :  { %361 = vmatpush.msrb.mxu2 %v717_v28  ;;  %399 = vmatpush.msrb.mxu3 %v722_v29 }
  0x49   :  { %263 = vmatpush.msrb.mxu0 %v717_v28  ;;  %301 = vmatpush.msrb.mxu1 %v722_v29 }
  0x4a   :  { %91 = vmatmul.f32.gmra.mxu0 %v56_v52  ;;  %129 = vmatmul.f32.gmra.mxu1 %v57_v53 }
  0x4b   :  { %182 = vmatmul.f32.gmra.mxu2 %v469_v54  ;;  %220 = vmatmul.f32.gmra.mxu3 %v470_v55 }
  0x4c   :  { %362 = vmatpush.msrb.mxu2 %v731_v30  ;;  %400 = vmatpush.msrb.mxu3 %v736_v31 }
  0x4d   :  { %264 = vmatpush.msrb.mxu0 %v731_v30  ;;  %302 = vmatpush.msrb.mxu1 %v736_v31 }
  0x52   :  { %94 = vmatmul.f32.gmra.mxu0 %v58_v56  ;;  %132 = vmatmul.f32.gmra.mxu1 %v59_v57 }
  0x53   :  { %185 = vmatmul.f32.gmra.mxu2 %v471_v58  ;;  %223 = vmatmul.f32.gmra.mxu3 %v472_v59 }
  0x5a   :  { %265 = vmatmul.f32.vlgmr.msrb.gmra.mxu0 %v473_v60  ;;  %303 = vmatmul.f32.vlgmr.msrb.gmra.mxu1 %v474_v61 }
  0x5b   :  { %363 = vmatmul.f32.vlgmr.msrb.gmra.mxu2 %v487_v62  ;;  %401 = vmatmul.f32.vlgmr.msrb.gmra.mxu3 %v488_v63  ;;  %v1005_v62 = vld [vmem:[%s1049_s2] ss:$0 sm:$0xff] }
  0x62   :  { %268 = vmatmul.f32.gmra.mxu0 %v475_v0  ;;  %306 = vmatmul.f32.gmra.mxu1 %v476_v1 }
  0x63   :  { %366 = vmatmul.f32.gmra.mxu2 %v489_v2  ;;  %404 = vmatmul.f32.gmra.mxu3 %v490_v3 }
  0x6a   :  { %271 = vmatmul.f32.gmra.mxu0 %v477_v4  ;;  %309 = vmatmul.f32.gmra.mxu1 %v478_v5 }
  0x6b   :  { %369 = vmatmul.f32.gmra.mxu2 %v491_v6  ;;  %407 = vmatmul.f32.gmra.mxu3 %v492_v7 }
  0x72   :  { %274 = vmatmul.f32.gmra.mxu0 %v479_v8  ;;  %312 = vmatmul.f32.gmra.mxu1 %v480_v9 }
  0x73   :  { %372 = vmatmul.f32.gmra.mxu2 %v493_v10  ;;  %410 = vmatmul.f32.gmra.mxu3 %v494_v11 }
  0x7a   :  { %277 = vmatmul.f32.gmra.mxu0 %v481_v12  ;;  %315 = vmatmul.f32.gmra.mxu1 %v482_v13 }
  0x7b   :  { %375 = vmatmul.f32.gmra.mxu2 %v495_v14  ;;  %413 = vmatmul.f32.gmra.mxu3 %v496_v15 }
  0x82   :  { %280 = vmatmul.f32.gmra.mxu0 %v483_v16  ;;  %318 = vmatmul.f32.gmra.mxu1 %v484_v17 }
  0x83   :  { %378 = vmatmul.f32.gmra.mxu2 %v497_v18  ;;  %416 = vmatmul.f32.gmra.mxu3 %v498_v19 }
  0x8a   :  { %283 = vmatmul.f32.gmra.mxu0 %v485_v20  ;;  %321 = vmatmul.f32.gmra.mxu1 %v486_v21 }
  0x8b   :  { %381 = vmatmul.f32.gmra.mxu2 %v499_v22  ;;  %419 = vmatmul.f32.gmra.mxu3 %v500_v23 }
  0x9f   :  { %v77_v24 = vpop.f32.mrf.mxu0  ;;  %v115_v25 = vpop.f32.mrf.mxu1 }
  0xa0   :  { %v116_v55 = vadd.f32 %v115_v25, %v77_v24 }
  0xa6   :  { %v168_v26 = vpop.f32.mrf.mxu2  ;;  %v206_v27 = vpop.f32.mrf.mxu3 }
  0xa7   :  { %v80_v28 = vpop.f32.mrf.mxu0  ;;  %v118_v29 = vpop.f32.mrf.mxu1  ;;  %v207_v54 = vadd.f32 %v206_v27, %v168_v26 }
  0xa8   :  { %v119_v3 = vadd.f32 %v118_v29, %v80_v28 }
  0xa9   :  { %v227_v57 = vmax.f32 %v116_v55, %v207_v54 }
  0xae   :  { %v171_v30 = vpop.f32.mrf.mxu2  ;;  %v209_v31 = vpop.f32.mrf.mxu3 }
  0xaf   :  { %v83_v32 = vpop.f32.mrf.mxu0  ;;  %v121_v33 = vpop.f32.mrf.mxu1  ;;  %v210_v1 = vadd.f32 %v209_v31, %v171_v30 }
  0xb0   :  { %v122_v16 = vadd.f32 %v121_v33, %v83_v32 }
  0xb1   :  { %v228_v6 = vmax.f32 %v119_v3, %v210_v1 }
  0xb6   :  { %v174_v34 = vpop.f32.mrf.mxu2  ;;  %v212_v35 = vpop.f32.mrf.mxu3 }
  0xb7   :  { %v86_v36 = vpop.f32.mrf.mxu0  ;;  %v124_v37 = vpop.f32.mrf.mxu1  ;;  %v213_v14 = vadd.f32 %v212_v35, %v174_v34 }
  0xb8   :  { %v125_v29 = vadd.f32 %v124_v37, %v86_v36 }
  0xb9   :  { %v229_v19 = vmax.f32 %v122_v16, %v213_v14 }
  0xbe   :  { %v177_v38 = vpop.f32.mrf.mxu2  ;;  %v215_v39 = vpop.f32.mrf.mxu3 }
  0xbf   :  { %v978_v40 = vpop.f32.mrf.mxu0  ;;  %v980_v41 = vpop.f32.mrf.mxu1  ;;  %v216_v27 = vadd.f32 %v215_v39, %v177_v38 }
  0xc0   :  { %v128_v36 = vadd.f32 %v980_v41, %v978_v40 }
  0xc1   :  { %v230_v32 = vmax.f32 %v125_v29, %v216_v27 }
  0xc6   :  { %v982_v42 = vpop.f32.mrf.mxu2  ;;  %v984_v43 = vpop.f32.mrf.mxu3 }
  0xc7   :  { %v986_v44 = vpop.f32.mrf.mxu0  ;;  %v988_v45 = vpop.f32.mrf.mxu1  ;;  %v219_v38 = vadd.f32 %v984_v43, %v982_v42 }
  0xc8   :  { %v131_v40 = vadd.f32 %v988_v45, %v986_v44 }
  0xce   :  { %v990_v46 = vpop.f32.mrf.mxu2  ;;  %v992_v47 = vpop.f32.mrf.mxu3 }
  0xcf   :  { %v994_v48 = vpop.f32.mrf.mxu0  ;;  %v996_v49 = vpop.f32.mrf.mxu1  ;;  %v222_v42 = vadd.f32 %v992_v47, %v990_v46 }
  0xd0   :  { %v134_v44 = vadd.f32 %v996_v49, %v994_v48 }
  0xd1   :  { %v232_v3 = vmax.f32 %v131_v40, %v222_v42 }
  0xd6   :  { %v998_v50 = vpop.f32.mrf.mxu2  ;;  %v1000_v51 = vpop.f32.mrf.mxu3 }
  0xd7   :  { %v266_v52 = vpop.f32.mrf.mxu0  ;;  %v304_v53 = vpop.f32.mrf.mxu1  ;;  %v225_v46 = vadd.f32 %v1000_v51, %v998_v50 }
  0xd8   :  { %v305_v56 = vadd.f32 %v304_v53, %v266_v52 }
  0xda   :  { %v325_v60 = vmax.f32 %v227_v57, %v305_v56  ;;  %v231_v57 = vmax.f32 %v128_v36, %v219_v38 }
  0xde   :  { %v364_v58 = vpop.f32.mrf.mxu2  ;;  %v402_v59 = vpop.f32.mrf.mxu3 }
  0xdf   :  { %v403_v61 = vadd.f32 %v402_v59, %v364_v58  ;;  %v269_v63 = vpop.f32.mrf.mxu0  ;;  %v307_v0 = vpop.f32.mrf.mxu1 }
  0xe0   :  { %v308_v5 = vadd.f32 %v307_v0, %v269_v63 }
  0xe1   :  { %v423_v2 = vmax.f32 %v325_v60, %v403_v61 }
  0xe2   :  { %v326_v10 = vmax.f32 %v228_v6, %v308_v5 }
  0xe3   :  { %v434_v4 = vadd.f32 %v1005_v62, %v423_v2 }
  0xe5   :  { %v441_v7 = vmax.f32 %v434_v4, 0.0 }
  0xe6   :  { %v367_v8 = vpop.f32.mrf.mxu2  ;;  %v405_v9 = vpop.f32.mrf.mxu3 }
  0xe7   :  { %448 = vst [vmem:[%s1050_s3] sm:$0xff] %v441_v7  ;;  %v406_v11 = vadd.f32 %v405_v9, %v367_v8  ;;  %v272_v12 = vpop.f32.mrf.mxu0  ;;  %v310_v13 = vpop.f32.mrf.mxu1 }
  0xe8   :  { %v311_v18 = vadd.f32 %v310_v13, %v272_v12  ;;  %v233_v12 = vmax.f32 %v134_v44, %v225_v46 }
  0xe9   :  { %v424_v15 = vmax.f32 %v326_v10, %v406_v11 }
  0xea   :  { %v327_v23 = vmax.f32 %v229_v19, %v311_v18 }
  0xeb   :  { %v435_v17 = vadd.f32 %v1005_v62, %v424_v15 }
  0xed   :  { %v442_v20 = vmax.f32 %v435_v17, 0.0 }
  0xee   :  { %v370_v21 = vpop.f32.mrf.mxu2  ;;  %v408_v22 = vpop.f32.mrf.mxu3 }
  0xef   :  { %449 = vst [vmem:[%s1050_s3 + $0x8] sm:$0xff] %v442_v20  ;;  %v409_v24 = vadd.f32 %v408_v22, %v370_v21  ;;  %v275_v25 = vpop.f32.mrf.mxu0  ;;  %v313_v26 = vpop.f32.mrf.mxu1 }
  0xf0   :  { %v314_v31 = vadd.f32 %v313_v26, %v275_v25 }
  0xf1   :  { %v425_v28 = vmax.f32 %v327_v23, %v409_v24 }
  0xf2   :  { %v328_v52 = vmax.f32 %v230_v32, %v314_v31 }
  0xf3   :  { %v436_v30 = vadd.f32 %v1005_v62, %v425_v28 }
  0xf5   :  { %v443_v33 = vmax.f32 %v436_v30, 0.0 }
  0xf6   :  { %v373_v34 = vpop.f32.mrf.mxu2  ;;  %v411_v35 = vpop.f32.mrf.mxu3 }
  0xf7   :  { %450 = vst [vmem:[%s1050_s3 + $0x10] sm:$0xff] %v443_v33  ;;  %v412_v53 = vadd.f32 %v411_v35, %v373_v34  ;;  %v278_v54 = vpop.f32.mrf.mxu0  ;;  %v316_v55 = vpop.f32.mrf.mxu1 }
  0xf8   :  { %v317_v56 = vadd.f32 %v316_v55, %v278_v54 }
  0xf9   :  { %v426_v39 = vmax.f32 %v328_v52, %v412_v53 }
  0xfa   :  { %v329_v61 = vmax.f32 %v231_v57, %v317_v56 }
  0xfb   :  { %v437_v37 = vadd.f32 %v1005_v62, %v426_v39 }
  0xfd   :  { %v444_v58 = vmax.f32 %v437_v37, 0.0 }
  0xfe   :  { %v376_v59 = vpop.f32.mrf.mxu2  ;;  %v414_v60 = vpop.f32.mrf.mxu3 }
  0xff   :  { %451 = vst [vmem:[%s1050_s3 + $0x18] sm:$0xff] %v444_v58  ;;  %v415_v63 = vadd.f32 %v414_v60, %v376_v59  ;;  %v281_v0 = vpop.f32.mrf.mxu0  ;;  %v319_v1 = vpop.f32.mrf.mxu1 }
 0x100   :  { %v320_v2 = vadd.f32 %v319_v1, %v281_v0 }
 0x101   :  { %v427_v43 = vmax.f32 %v329_v61, %v415_v63 }
 0x102   :  { %v330_v7 = vmax.f32 %v232_v3, %v320_v2 }
 0x103   :  { %v438_v41 = vadd.f32 %v1005_v62, %v427_v43 }
 0x105   :  { %v445_v4 = vmax.f32 %v438_v41, 0.0 }
 0x106   :  { %v379_v5 = vpop.f32.mrf.mxu2  ;;  %v417_v6 = vpop.f32.mrf.mxu3 }
 0x107   :  { %452 = vst [vmem:[%s1050_s3 + $0x20] sm:$0xff] %v445_v4  ;;  %v418_v8 = vadd.f32 %v417_v6, %v379_v5  ;;  %v284_v9 = vpop.f32.mrf.mxu0  ;;  %v322_v10 = vpop.f32.mrf.mxu1 }
 0x108   :  { %v323_v11 = vadd.f32 %v322_v10, %v284_v9 }
 0x109   :  { %v428_v47 = vmax.f32 %v330_v7, %v418_v8 }
 0x10a   :  { %v331_v16 = vmax.f32 %v233_v12, %v323_v11 }
 0x10b   :  { %v439_v45 = vadd.f32 %v1005_v62, %v428_v47 }
 0x10d   :  { %v446_v13 = vmax.f32 %v439_v45, 0.0 }
 0x10e   :  { %v382_v14 = vpop.f32.mrf.mxu2  ;;  %v420_v15 = vpop.f32.mrf.mxu3 }
 0x10f   :  { %453 = vst [vmem:[%s1050_s3 + $0x28] sm:$0xff] %v446_v13  ;;  %v421_v17 = vadd.f32 %v420_v15, %v382_v14 }
 0x111   :  { %v429_v18 = vmax.f32 %v331_v16, %v421_v17 }
 0x113   :  { %v440_v50 = vadd.f32 %v1005_v62, %v429_v18 }
 0x115   :  { %v447_v51 = vmax.f32 %v440_v50, 0.0 }
 0x117   :  { %454 = vst [vmem:[%s1050_s3 + $0x30] sm:$0xff] %v447_v51 }

// kernel: convnet_forward.5
= control target key start
LH: loop header
LB: loop body
LE: loop exit
PB: predicated region body
PF: predicated region fallthrough
CT: control target
= control target key end

     0   :  { %s620_s1 = inlined_call_operand.vmem [shape: f32[512,128], index: 1, kind: input, shape index: {}]   ;;  %s621_s2 = inlined_call_operand.vmem [shape: f32[1,128], index: 2, kind: input, shape index: {}]   ;;  %s622_s0 = inlined_call_operand.vmem [shape: f32[8,512], index: 0, kind: input, shape index: {}]   ;;  %s623_s3 = inlined_call_operand.vmem [shape: f32[128,128], index: 3, kind: input, shape index: {}]   ;;  %s624_s4 = inlined_call_operand.vmem [shape: f32[1,128], index: 4, kind: input, shape index: {}]   ;;  %s625_s5 = inlined_call_operand.vmem [shape: f32[128,128], index: 5, kind: input, shape index: {}]   ;;  %s626_s6 = inlined_call_operand.vmem [shape: f32[1,128], index: 6, kind: input, shape index: {}]   ;;  %s627_s7 = inlined_call_operand.vmem [shape: f32[8,128], index: 7, kind: output, shape index: {}]  }
   0x1   :  { %v77_v0 = vld [vmem:[%s620_s1 + $0x178] sm:$0xff]  ;;  %v76_v2 = vld [vmem:[%s620_s1 + $0x170] sm:$0xff]  ;;  %v75_v6 = vld [vmem:[%s620_s1 + $0x168] sm:$0xff] }
   0x2   :  { %v45_v1 = vld [vmem:[%s620_s1 + $0x78] sm:$0xff]  ;;  %138 = vmatpush.msra.mxu2 %v77_v0  ;;  %v44_v4 = vld [vmem:[%s620_s1 + $0x70] sm:$0xff]  ;;  %v43_v8 = vld [vmem:[%s620_s1 + $0x68] sm:$0xff] }
   0x3   :  { %98 = vmatpush.msra.mxu0 %v45_v1  ;;  %v93_v3 = vld [vmem:[%s620_s1 + $0x1f8] sm:$0xff]  ;;  %v92_v7 = vld [vmem:[%s620_s1 + $0x1f0] sm:$0xff]  ;;  %v91_v10 = vld [vmem:[%s620_s1 + $0x1e8] sm:$0xff] }
   0x4   :  { %v61_v5 = vld [vmem:[%s620_s1 + $0xf8] sm:$0xff]  ;;  %158 = vmatpush.msra.mxu3 %v93_v3  ;;  %139 = vmatpush.msra.mxu2 %v76_v2  ;;  %v60_v9 = vld [vmem:[%s620_s1 + $0xf0] sm:$0xff]  ;;  %v74_v11 = vld [vmem:[%s620_s1 + $0x160] sm:$0xff] }
   0x5   :  { %118 = vmatpush.msra.mxu1 %v61_v5  ;;  %99 = vmatpush.msra.mxu0 %v44_v4  ;;  %v42_v12 = vld [vmem:[%s620_s1 + $0x60] sm:$0xff]  ;;  %v59_v13 = vld [vmem:[%s620_s1 + $0xe8] sm:$0xff]  ;;  %v73_v16 = vld [vmem:[%s620_s1 + $0x158] sm:$0xff] }
   0x6   :  { %159 = vmatpush.msra.mxu3 %v92_v7  ;;  %140 = vmatpush.msra.mxu2 %v75_v6  ;;  %v90_v14 = vld [vmem:[%s620_s1 + $0x1e0] sm:$0xff]  ;;  %v41_v17 = vld [vmem:[%s620_s1 + $0x58] sm:$0xff]  ;;  %v72_v20 = vld [vmem:[%s620_s1 + $0x150] sm:$0xff] }
   0x7   :  { %119 = vmatpush.msra.mxu1 %v60_v9  ;;  %100 = vmatpush.msra.mxu0 %v43_v8  ;;  %v58_v15 = vld [vmem:[%s620_s1 + $0xe0] sm:$0xff]  ;;  %v89_v18 = vld [vmem:[%s620_s1 + $0x1d8] sm:$0xff]  ;;  %v40_v21 = vld [vmem:[%s620_s1 + $0x50] sm:$0xff] }
   0x8   :  { %160 = vmatpush.msra.mxu3 %v91_v10  ;;  %141 = vmatpush.msra.mxu2 %v74_v11  ;;  %v57_v19 = vld [vmem:[%s620_s1 + $0xd8] sm:$0xff]  ;;  %v88_v22 = vld [vmem:[%s620_s1 + $0x1d0] sm:$0xff]  ;;  %v71_v24 = vld [vmem:[%s620_s1 + $0x148] sm:$0xff] }
   0x9   :  { %120 = vmatpush.msra.mxu1 %v59_v13  ;;  %101 = vmatpush.msra.mxu0 %v42_v12  ;;  %v56_v23 = vld [vmem:[%s620_s1 + $0xd0] sm:$0xff]  ;;  %v39_v25 = vld [vmem:[%s620_s1 + $0x48] sm:$0xff]  ;;  %v70_v28 = vld [vmem:[%s620_s1 + $0x140] sm:$0xff] }
   0xa   :  { %161 = vmatpush.msra.mxu3 %v90_v14  ;;  %142 = vmatpush.msra.mxu2 %v73_v16  ;;  %v87_v26 = vld [vmem:[%s620_s1 + $0x1c8] sm:$0xff]  ;;  %v38_v29 = vld [vmem:[%s620_s1 + $0x40] sm:$0xff]  ;;  %v69_v32 = vld [vmem:[%s620_s1 + $0x138] sm:$0xff] }
   0xb   :  { %121 = vmatpush.msra.mxu1 %v58_v15  ;;  %102 = vmatpush.msra.mxu0 %v41_v17  ;;  %v55_v27 = vld [vmem:[%s620_s1 + $0xc8] sm:$0xff]  ;;  %v86_v30 = vld [vmem:[%s620_s1 + $0x1c0] sm:$0xff]  ;;  %v37_v33 = vld [vmem:[%s620_s1 + $0x38] sm:$0xff] }
   0xc   :  { %162 = vmatpush.msra.mxu3 %v89_v18  ;;  %143 = vmatpush.msra.mxu2 %v72_v20  ;;  %v54_v31 = vld [vmem:[%s620_s1 + $0xc0] sm:$0xff]  ;;  %v85_v34 = vld [vmem:[%s620_s1 + $0x1b8] sm:$0xff]  ;;  %v68_v36 = vld [vmem:[%s620_s1 + $0x130] sm:$0xff] }
   0xd   :  { %122 = vmatpush.msra.mxu1 %v57_v19  ;;  %103 = vmatpush.msra.mxu0 %v40_v21  ;;  %v53_v35 = vld [vmem:[%s620_s1 + $0xb8] sm:$0xff]  ;;  %v36_v37 = vld [vmem:[%s620_s1 + $0x30] sm:$0xff]  ;;  %v67_v40 = vld [vmem:[%s620_s1 + $0x128] sm:$0xff] }
   0xe   :  { %163 = vmatpush.msra.mxu3 %v88_v22  ;;  %144 = vmatpush.msra.mxu2 %v71_v24  ;;  %v84_v38 = vld [vmem:[%s620_s1 + $0x1b0] sm:$0xff]  ;;  %v35_v41 = vld [vmem:[%s620_s1 + $0x28] sm:$0xff]  ;;  %v66_v44 = vld [vmem:[%s620_s1 + $0x120] sm:$0xff] }
   0xf   :  { %123 = vmatpush.msra.mxu1 %v56_v23  ;;  %104 = vmatpush.msra.mxu0 %v39_v25  ;;  %v52_v39 = vld [vmem:[%s620_s1 + $0xb0] sm:$0xff]  ;;  %v83_v42 = vld [vmem:[%s620_s1 + $0x1a8] sm:$0xff]  ;;  %v34_v45 = vld [vmem:[%s620_s1 + $0x20] sm:$0xff] }
  0x10   :  { %164 = vmatpush.msra.mxu3 %v87_v26  ;;  %145 = vmatpush.msra.mxu2 %v70_v28  ;;  %v51_v43 = vld [vmem:[%s620_s1 + $0xa8] sm:$0xff]  ;;  %v82_v46 = vld [vmem:[%s620_s1 + $0x1a0] sm:$0xff]  ;;  %v65_v48 = vld [vmem:[%s620_s1 + $0x118] sm:$0xff] }
  0x11   :  { %124 = vmatpush.msra.mxu1 %v55_v27  ;;  %105 = vmatpush.msra.mxu0 %v38_v29  ;;  %v50_v47 = vld [vmem:[%s620_s1 + $0xa0] sm:$0xff]  ;;  %v33_v49 = vld [vmem:[%s620_s1 + $0x18] sm:$0xff]  ;;  %v64_v52 = vld [vmem:[%s620_s1 + $0x110] sm:$0xff] }
  0x12   :  { %165 = vmatpush.msra.mxu3 %v86_v30  ;;  %146 = vmatpush.msra.mxu2 %v69_v32  ;;  %v81_v50 = vld [vmem:[%s620_s1 + $0x198] sm:$0xff]  ;;  %v32_v53 = vld [vmem:[%s620_s1 + $0x10] sm:$0xff]  ;;  %v63_v56 = vld [vmem:[%s620_s1 + $0x108] sm:$0xff] }
  0x13   :  { %125 = vmatpush.msra.mxu1 %v54_v31  ;;  %106 = vmatpush.msra.mxu0 %v37_v33  ;;  %v49_v51 = vld [vmem:[%s620_s1 + $0x98] sm:$0xff]  ;;  %v80_v54 = vld [vmem:[%s620_s1 + $0x190] sm:$0xff]  ;;  %v31_v57 = vld [vmem:[%s620_s1 + $0x8] sm:$0xff] }
  0x14   :  { %166 = vmatpush.msra.mxu3 %v85_v34  ;;  %147 = vmatpush.msra.mxu2 %v68_v36  ;;  %v48_v55 = vld [vmem:[%s620_s1 + $0x90] sm:$0xff]  ;;  %v79_v58 = vld [vmem:[%s620_s1 + $0x188] sm:$0xff]  ;;  %v62_v60 = vld [vmem:[%s620_s1 + $0x100] sm:$0xff] }
  0x15   :  { %126 = vmatpush.msra.mxu1 %v53_v35  ;;  %107 = vmatpush.msra.mxu0 %v36_v37  ;;  %v47_v59 = vld [vmem:[%s620_s1 + $0x88] sm:$0xff]  ;;  %v30_v61 = vld [vmem:[%s620_s1] sm:$0xff]  ;;  %v28_v62 = vld [vmem:[%s622_s0 + $0x10] sm:$0xff] }
  0x16   :  { %167 = vmatpush.msra.mxu3 %v84_v38  ;;  %148 = vmatpush.msra.mxu2 %v67_v40  ;;  %v78_v63 = vld [vmem:[%s620_s1 + $0x180] sm:$0xff]  ;;  %v29_v1 = vld [vmem:[%s622_s0 + $0x18] sm:$0xff]  ;;  %v27_v4 = vld [vmem:[%s622_s0 + $0x8] sm:$0xff] }
  0x17   :  { %127 = vmatpush.msra.mxu1 %v52_v39  ;;  %108 = vmatpush.msra.mxu0 %v35_v41  ;;  %v26_v0 = vld [vmem:[%s622_s0] sm:$0xff]  ;;  %v194_v3 = vld [vmem:[%s623_s3 + $0x78] sm:$0xff]  ;;  %v193_v5 = vld [vmem:[%s623_s3 + $0x70] sm:$0xff] }
  0x18   :  { %168 = vmatpush.msra.mxu3 %v83_v42  ;;  %149 = vmatpush.msra.mxu2 %v66_v44  ;;  %v46_v2 = vld [vmem:[%s620_s1 + $0x80] sm:$0xff]  ;;  %v192_v6 = vld [vmem:[%s623_s3 + $0x68] sm:$0xff]  ;;  %v190_v8 = vld [vmem:[%s623_s3 + $0x58] sm:$0xff] }
  0x19   :  { %128 = vmatpush.msra.mxu1 %v51_v43  ;;  %109 = vmatpush.msra.mxu0 %v34_v45  ;;  %v191_v7 = vld [vmem:[%s623_s3 + $0x60] sm:$0xff]  ;;  %v189_v9 = vld [vmem:[%s623_s3 + $0x50] sm:$0xff]  ;;  %v188_v10 = vld [vmem:[%s623_s3 + $0x48] sm:$0xff] }
  0x1a   :  { %169 = vmatpush.msra.mxu3 %v82_v46  ;;  %150 = vmatpush.msra.mxu2 %v65_v48  ;;  %v187_v11 = vld [vmem:[%s623_s3 + $0x40] sm:$0xff]  ;;  %v186_v12 = vld [vmem:[%s623_s3 + $0x38] sm:$0xff]  ;;  %v185_v13 = vld [vmem:[%s623_s3 + $0x30] sm:$0xff] }
  0x1b   :  { %129 = vmatpush.msra.mxu1 %v50_v47  ;;  %110 = vmatpush.msra.mxu0 %v33_v49  ;;  %v184_v14 = vld [vmem:[%s623_s3 + $0x28] sm:$0xff]  ;;  %v183_v15 = vld [vmem:[%s623_s3 + $0x20] sm:$0xff]  ;;  %v182_v16 = vld [vmem:[%s623_s3 + $0x18] sm:$0xff] }
  0x1c   :  { %170 = vmatpush.msra.mxu3 %v81_v50  ;;  %151 = vmatpush.msra.mxu2 %v64_v52  ;;  %v181_v17 = vld [vmem:[%s623_s3 + $0x10] sm:$0xff]  ;;  %v180_v18 = vld [vmem:[%s623_s3 + $0x8] sm:$0xff]  ;;  %v179_v19 = vld [vmem:[%s623_s3] sm:$0xff] }
  0x1d   :  { %130 = vmatpush.msra.mxu1 %v49_v51  ;;  %111 = vmatpush.msra.mxu0 %v32_v53  ;;  %v235_v20 = vld [vmem:[%s625_s5 + $0x78] sm:$0xff]  ;;  %v234_v21 = vld [vmem:[%s625_s5 + $0x70] sm:$0xff]  ;;  %v233_v22 = vld [vmem:[%s625_s5 + $0x68] sm:$0xff] }
  0x1e   :  { %171 = vmatpush.msra.mxu3 %v80_v54  ;;  %152 = vmatpush.msra.mxu2 %v63_v56  ;;  %v232_v23 = vld [vmem:[%s625_s5 + $0x60] sm:$0xff]  ;;  %v231_v24 = vld [vmem:[%s625_s5 + $0x58] sm:$0xff]  ;;  %v230_v25 = vld [vmem:[%s625_s5 + $0x50] sm:$0xff] }
  0x1f   :  { %131 = vmatpush.msra.mxu1 %v48_v55  ;;  %112 = vmatpush.msra.mxu0 %v31_v57  ;;  %v229_v26 = vld [vmem:[%s625_s5 + $0x48] sm:$0xff]  ;;  %v228_v27 = vld [vmem:[%s625_s5 + $0x40] sm:$0xff]  ;;  %v227_v28 = vld [vmem:[%s625_s5 + $0x38] sm:$0xff] }
  0x20   :  { %172 = vmatpush.msra.mxu3 %v79_v58  ;;  %153 = vmatpush.msra.mxu2 %v62_v60  ;;  %v226_v29 = vld [vmem:[%s625_s5 + $0x30] sm:$0xff]  ;;  %v265_v30 = vld [vmem:[%s621_s2] ss:$0 sm:$0xff]  ;;  %v225_v31 = vld [vmem:[%s625_s5 + $0x28] sm:$0xff] }
  0x21   :  { %132 = vmatpush.msra.mxu1 %v47_v59  ;;  %113 = vmatpush.msra.mxu0 %v30_v61  ;;  %v224_v33 = vld [vmem:[%s625_s5 + $0x20] sm:$0xff]  ;;  %v223_v36 = vld [vmem:[%s625_s5 + $0x18] sm:$0xff]  ;;  %v222_v43 = vld [vmem:[%s625_s5 + $0x10] sm:$0xff] }
  0x22   :  { %154 = vmatmul.f32.vlgmr.msra.gmra.mxu2 %v28_v62  ;;  %173 = vmatpush.msra.mxu3 %v78_v63  ;;  %v221_v44 = vld [vmem:[%s625_s5 + $0x8] sm:$0xff]  ;;  %v220_v45 = vld [vmem:[%s625_s5] sm:$0xff] }
  0x23   :  { %114 = vmatmul.f32.vlgmr.msra.gmra.mxu0 %v26_v0  ;;  %174 = vmatmul.f32.vlgmr.msra.gmra.mxu3 %v29_v1  ;;  %v266_v46 = vld [vmem:[%s624_s4] ss:$0 sm:$0xff] }
  0x24   :  { %133 = vmatpush.msra.mxu1 %v46_v2  ;;  %199 = vmatpush.msrb.mxu0 %v194_v3  ;;  %v267_v50 = vld [vmem:[%s626_s6] ss:$0 sm:$0xff] }
  0x25   :  { %134 = vmatmul.f32.vlgmr.msra.gmra.mxu1 %v27_v4 }
  0x26   :  { %200 = vmatpush.msrb.mxu0 %v193_v5  ;;  %240 = vmatpush.msrb.mxu1 %v235_v20 }
  0x28   :  { %201 = vmatpush.msrb.mxu0 %v192_v6  ;;  %241 = vmatpush.msrb.mxu1 %v234_v21 }
  0x2a   :  { %202 = vmatpush.msrb.mxu0 %v191_v7  ;;  %242 = vmatpush.msrb.mxu1 %v233_v22 }
  0x2c   :  { %203 = vmatpush.msrb.mxu0 %v190_v8  ;;  %243 = vmatpush.msrb.mxu1 %v232_v23 }
  0x2e   :  { %204 = vmatpush.msrb.mxu0 %v189_v9  ;;  %244 = vmatpush.msrb.mxu1 %v231_v24 }
  0x30   :  { %205 = vmatpush.msrb.mxu0 %v188_v10  ;;  %245 = vmatpush.msrb.mxu1 %v230_v25 }
  0x32   :  { %206 = vmatpush.msrb.mxu0 %v187_v11  ;;  %246 = vmatpush.msrb.mxu1 %v229_v26 }
  0x34   :  { %207 = vmatpush.msrb.mxu0 %v186_v12  ;;  %247 = vmatpush.msrb.mxu1 %v228_v27 }
  0x36   :  { %208 = vmatpush.msrb.mxu0 %v185_v13  ;;  %248 = vmatpush.msrb.mxu1 %v227_v28 }
  0x38   :  { %209 = vmatpush.msrb.mxu0 %v184_v14  ;;  %249 = vmatpush.msrb.mxu1 %v226_v29 }
  0x3a   :  { %210 = vmatpush.msrb.mxu0 %v183_v15  ;;  %250 = vmatpush.msrb.mxu1 %v225_v31 }
  0x3c   :  { %211 = vmatpush.msrb.mxu0 %v182_v16  ;;  %251 = vmatpush.msrb.mxu1 %v224_v33 }
  0x3e   :  { %212 = vmatpush.msrb.mxu0 %v181_v17  ;;  %252 = vmatpush.msrb.mxu1 %v223_v36 }
  0x40   :  { %213 = vmatpush.msrb.mxu0 %v180_v18  ;;  %253 = vmatpush.msrb.mxu1 %v222_v43 }
  0x42   :  { %214 = vmatpush.msrb.mxu0 %v179_v19  ;;  %254 = vmatpush.msrb.mxu1 %v221_v44 }
  0x44   :  { %255 = vmatpush.msrb.mxu1 %v220_v45 }
  0xa0   :  { %v115_v32 = vpop.f32.mrf.mxu0 }
  0xa1   :  { %v116_v34 = vadd.f32 %v265_v30, %v115_v32 }
  0xa2   :  { %v135_v35 = vpop.f32.mrf.mxu1 }
  0xa3   :  { %v136_v37 = vadd.f32 %v135_v35, %v116_v34 }
  0xa5   :  { %v155_v38 = vpop.f32.mrf.mxu2 }
  0xa6   :  { %v156_v39 = vadd.f32 %v155_v38, %v136_v37  ;;  %v175_v40 = vpop.f32.mrf.mxu3 }
  0xa8   :  { %v176_v41 = vadd.f32 %v175_v40, %v156_v39 }
  0xaa   :  { %v178_v42 = vmax.f32 %v176_v41, 0.0 }
  0xac   :  { %215 = vmatmul.f32.vlgmr.msrb.gmra.mxu0 %v178_v42 }
 0x129   :  { %v216_v47 = vpop.f32.mrf.mxu0 }
 0x12a   :  { %v217_v48 = vadd.f32 %v266_v46, %v216_v47 }
 0x12c   :  { %v219_v49 = vmax.f32 %v217_v48, 0.0 }
 0x12e   :  { %256 = vmatmul.f32.vlgmr.msrb.gmra.mxu1 %v219_v49 }
 0x1ab   :  { %v257_v51 = vpop.f32.mrf.mxu1 }
 0x1ac   :  { %v258_v52 = vadd.f32 %v267_v50, %v257_v51 }
 0x1ae   :  { %260 = vst [vmem:[%s627_s7] sm:$0xff] %v258_v52 }

</bundles_post_ra>
